<compile_context>
chip_gen: v7x
topology: tpu7x:2x2x1
jax: 0.10.0
libtpu: 0.0.40
codegen_flags: <defaults>
</compile_context>

<pallas_src>
import math
import functools

import jax
import jax.numpy as jnp
from jax import lax
from jax.experimental import pallas as pl
from jax.experimental.pallas import tpu as pltpu


NEG_INF = -1e30                       # finite mask value (avoids -inf - -inf NaN)
_VMEM_LIMIT = 48 * 1024 * 1024        # headroom below v7x's 64 MiB physical VMEM


def _row_granule(dtype):
    """Sublane granule: 8 rows for 4-byte dtypes, 16 for bf16/fp16, 32 for int8."""
    return max(8, 32 // jnp.dtype(dtype).itemsize)


def _tile(dim, target, granule):
    """Largest multiple of `granule` <= target that divides `dim`, else `dim`."""
    if dim <= target:
        return dim
    t = (min(target, dim) // granule) * granule
    while t >= granule:
        if dim % t == 0:
            return t
        t -= granule
    return dim


# --------------------------- 1) fused QKV projection -------------------------
def _qkv_proj_kernel(x_ref, w_ref, b_ref, o_ref, *, gb, head_dim, n_blocks):
    x = x_ref[...]                                        # (tm, K), native dtype
    for p in range(n_blocks):                             # 3H // gb group blocks
        # Wide dot: N = gb * head_dim lanes per MXU push, f32 accumulation.
        r = jnp.dot(x, w_ref[p], preferred_element_type=jnp.float32)
        r = r + b_ref[p].astype(jnp.float32)              # (tm, gb*D)
        # Static lane-slices only at the final store (once per M tile).
        for j in range(gb):
            g = p * gb + j
            o_ref[g] = r[:, j * head_dim:(j + 1) * head_dim].astype(o_ref.dtype)


def qkv_projection(x, w_g, b_g, *, gb, head_dim, block_m=256):
    """x: (M, K); w_g: (3H/gb, K, gb*D); b_g: (3H/gb, 1, gb*D) -> (3H, M, D)."""
    M, K = x.shape
    GB, Kw, ND = w_g.shape
    assert K == Kw and ND == gb * head_dim
    G = GB * gb
    tm = _tile(M, block_m, _row_granule(x.dtype))
    kernel = functools.partial(_qkv_proj_kernel, gb=gb, head_dim=head_dim,
                               n_blocks=GB)
    return pl.pallas_call(
        kernel,
        out_shape=jax.ShapeDtypeStruct((G, M, head_dim), x.dtype),
        grid_spec=pltpu.PrefetchScalarGridSpec(
            num_scalar_prefetch=0,
            grid=(M // tm,),                                    # single parallel axis
            in_specs=[
                pl.BlockSpec((tm, K), lambda i: (i, 0)),        # x streamed once
                pl.BlockSpec((GB, K, ND), lambda i: (0, 0, 0)),  # weights resident
                pl.BlockSpec((GB, 1, ND), lambda i: (0, 0, 0)),  # bias resident
            ],
            out_specs=pl.BlockSpec((G, tm, head_dim), lambda i: (0, i, 0)),
        ),
        compiler_params=pltpu.CompilerParams(
            dimension_semantics=("parallel",),
            vmem_limit_bytes=_VMEM_LIMIT),
    )(x, w_g, b_g)


# ------------------------ 2) blocked flash attention -------------------------
def _flash_attn_kernel(q_ref, k_ref, v_ref, o_ref, m_sc, l_sc, acc_sc, *,
                       causal, sm_scale, block_q, block_kv, head_dim, hb):
    qi = pl.program_id(2)
    ki = pl.program_id(3)

    @pl.when(ki == 0)
    def _init():
        m_sc[...] = jnp.full_like(m_sc, NEG_INF)
        l_sc[...] = jnp.zeros_like(l_sc)
        acc_sc[...] = jnp.zeros_like(acc_sc)

    q_first = qi * block_q
    q_last = q_first + block_q - 1
    kv_first = ki * block_kv
    kv_last = kv_first + block_kv - 1
    if causal:
        last_ki = q_last // block_kv          # last KV tile touching the diagonal
    else:
        last_ki = pl.num_programs(3) - 1

    def _update(apply_mask):
        q = q_ref[...]                        # (hb, bq, D), native dtype
        k = k_ref[...]                        # (hb, bkv, D)
        s = jnp.einsum("hqd,hkd->hqk", q, k,
                       preferred_element_type=jnp.float32) * sm_scale
        if apply_mask:                        # only on diagonal-straddling tiles
            rows = q_first + lax.broadcasted_iota(
                jnp.int32, (block_q, block_kv), 0)
            cols = kv_first + lax.broadcasted_iota(
                jnp.int32, (block_q, block_kv), 1)
            s = jnp.where((rows >= cols)[None, :, :], s, NEG_INF)

        m_prev = m_sc[...]                    # (hb, bq, 1)
        m_new = jnp.maximum(m_prev, jnp.max(s, axis=-1, keepdims=True))
        alpha = jnp.exp(m_prev - m_new)
        p = jnp.exp(s - m_new)                # (hb, bq, bkv), unnormalized
        l_sc[...] = alpha * l_sc[...] + jnp.sum(p, axis=-1, keepdims=True)
        acc_sc[...] = alpha * acc_sc[...] + jnp.einsum(
            "hqk,hkd->hqd", p.astype(v_ref.dtype), v_ref[...],
            preferred_element_type=jnp.float32)
        m_sc[...] = m_new

    if causal:
        work = kv_first <= q_last             # tile not entirely above diagonal
        diag = kv_last > q_first              # tile needs the causal mask
        pl.when(jnp.logical_and(work, diag))(lambda: _update(True))
        pl.when(jnp.logical_and(work, jnp.logical_not(diag)))(lambda: _update(False))
    else:
        _update(False)

    # Deferred softmax normalization + head merge into lane-dense (bq, hb*D).
    @pl.when(ki == last_ki)
    def _finalize():
        inv_l = pl.reciprocal(l_sc[...], approx=True)      # (hb, bq, 1)
        out = acc_sc[...] * inv_l                          # (hb, bq, D) f32
        for j in range(hb):
            o_ref[:, j * head_dim:(j + 1) * head_dim] = out[j].astype(o_ref.dtype)


def flash_attention(qkv3, *, batch, seq_len, num_heads, head_dim, heads_per_step,
                    causal, out_dtype, block_q=512, block_kv=512):
    """qkv3: (3H, B*T, D) (q heads, then k heads, then v heads) -> (B*T, H*D)."""
    B, T, H, D, hb = batch, seq_len, num_heads, head_dim, heads_per_step
    assert H % hb == 0
    C = H * D
    gran = _row_granule(qkv3.dtype)
    bq = _tile(T, block_q, gran)
    bkv = _tile(T, block_kv, gran)
    nq = T // bq
    nkv = T // bkv
    sm_scale = 1.0 / math.sqrt(D)

    def _kvb(qi, ki):
        if causal:
            # Clamp skipped (above-diagonal) steps onto the diagonal block so
            # their K/V DMAs are deduped by the pipeline (same block index).
            return jnp.minimum(ki, (qi * bq + bq - 1) // bkv)
        return ki

    q_spec = pl.BlockSpec((hb, bq, D),
                          lambda b, h, qi, ki: (h, b * nq + qi, 0))
    k_spec = pl.BlockSpec((hb, bkv, D),
                          lambda b, h, qi, ki: (H // hb + h, b * nkv + _kvb(qi, ki), 0))
    v_spec = pl.BlockSpec((hb, bkv, D),
                          lambda b, h, qi, ki: (2 * (H // hb) + h, b * nkv + _kvb(qi, ki), 0))
    # Head-merged, lane-dense output: head block h owns columns [h*hb*D, (h+1)*hb*D).
    o_spec = pl.BlockSpec((bq, hb * D),
                          lambda b, h, qi, ki: (b * nq + qi, h))

    kernel = functools.partial(_flash_attn_kernel, causal=causal,
                               sm_scale=sm_scale, block_q=bq, block_kv=bkv,
                               head_dim=D, hb=hb)
    return pl.pallas_call(
        kernel,
        out_shape=jax.ShapeDtypeStruct((B * T, C), out_dtype),
        grid_spec=pltpu.PrefetchScalarGridSpec(
            num_scalar_prefetch=0,
            grid=(B, H // hb, nq, nkv),
            in_specs=[q_spec, k_spec, v_spec],
            out_specs=o_spec,
            scratch_shapes=[
                pltpu.VMEM((hb, bq, 1), jnp.float32),   # running max m
                pltpu.VMEM((hb, bq, 1), jnp.float32),   # running denom l
                pltpu.VMEM((hb, bq, D), jnp.float32),   # unnormalized accumulator
            ],
        ),
        compiler_params=pltpu.CompilerParams(
            dimension_semantics=("parallel", "parallel", "parallel", "arbitrary"),
            vmem_limit_bytes=_VMEM_LIMIT),
    )(qkv3, qkv3, qkv3)


# ----------------------------- 3) output projection --------------------------
def _out_proj_kernel(y_ref, w_ref, b_ref, o_ref):
    r = jnp.dot(y_ref[...], w_ref[...], preferred_element_type=jnp.float32)
    o_ref[...] = (r + b_ref[...].astype(jnp.float32)).astype(o_ref.dtype)


def out_projection(y, w, b2, *, block_m=256):
    """y: (M, C); w: (C, C); b2: (1, C) -> (M, C) = y @ w + b."""
    M, K = y.shape
    Kw, N = w.shape
    assert K == Kw
    tm = _tile(M, block_m, _row_granule(y.dtype))
    return pl.pallas_call(
        _out_proj_kernel,
        out_shape=jax.ShapeDtypeStruct((M, N), y.dtype),
        grid_spec=pltpu.PrefetchScalarGridSpec(
            num_scalar_prefetch=0,
            grid=(M // tm,),                                 # single parallel axis
            in_specs=[
                pl.BlockSpec((tm, K), lambda i: (i, 0)),     # y streamed once
                pl.BlockSpec((K, N), lambda i: (0, 0)),      # weights resident
                pl.BlockSpec((1, N), lambda i: (0, 0)),      # bias resident
            ],
            out_specs=pl.BlockSpec((tm, N), lambda i: (i, 0)),
        ),
        compiler_params=pltpu.CompilerParams(
            dimension_semantics=("parallel",),
            vmem_limit_bytes=_VMEM_LIMIT),
    )(y, w, b2)


# ------------------------------ Module wrapper -------------------------------
class CausalSelfFA3AttentionPallas:
    def __init__(self, n_embd, n_head, causal=True, bias=True, dropout=0.0,
                 key=None, block_m=256, block_q=512, block_kv=512):
        assert n_embd % n_head == 0
        self.n_embd = n_embd
        self.n_head = n_head
        self.causal = causal
        self.dropout = dropout
        self.block_m = block_m
        self.block_q = block_q
        self.block_kv = block_kv
        H, D = n_head, n_embd // n_head

        # gb: heads fused per QKV dot so that N = gb*D targets the MXU width.
        gb = 1
        while H % (gb * 2) == 0 and (gb * 2) * D <= 256:
            gb *= 2
        self.gb = gb
        # hb: heads per flash-attention step; hb*D must be 128-aligned (or the
        # full embedding) so the merged output stores are lane-dense/legal.
        hb = None
        for cand in range(1, H + 1):
            if H % cand == 0 and (cand * D) % 128 == 0:
                hb = cand
                break
        self.hb = hb if hb is not None else H

        if key is None:
            key = jax.random.PRNGKey(0)
        k1, k2, k3, k4 = jax.random.split(key, 4)
        bound = 1.0 / math.sqrt(n_embd)
        # Canonical (PyTorch-equivalent) parameters; used by the reference.
        self.w_attn = jax.random.uniform(k1, (n_embd, 3 * n_embd), jnp.float32,
                                         -bound, bound)
        self.b_attn = (jax.random.uniform(k2, (3 * n_embd,), jnp.float32,
                                          -bound, bound)
                       if bias else jnp.zeros((3 * n_embd,), jnp.float32))
        self.w_proj = jax.random.uniform(k3, (n_embd, n_embd), jnp.float32,
                                         -bound, bound)
        self.b_proj = (jax.random.uniform(k4, (n_embd,), jnp.float32,
                                          -bound, bound)
                       if bias else jnp.zeros((n_embd,), jnp.float32))
        # Kernel-friendly weight layouts (one-time reshape at init).
        # (C, 3C) -> (3H/gb, C, gb*D): group block p holds gb consecutive heads
        # of the same q/k/v type (column ordering in w_attn is already g*D + d).
        GB = 3 * H // gb
        self.w_attn_g = (self.w_attn.reshape(n_embd, GB, gb * D)
                         .transpose(1, 0, 2))
        self.b_attn_g = self.b_attn.reshape(GB, 1, gb * D)
        self.b_proj2 = self.b_proj.reshape(1, n_embd)

    def __call__(self, x):
        B, T, C = x.shape
        H = self.n_head
        D = C // H
        M = B * T

        # 1) Fused QKV projection -> (3H, M, D): x read once, resident weights.
        qkv3 = qkv_projection(x.reshape(M, C), self.w_attn_g, self.b_attn_g,
                              gb=self.gb, head_dim=D, block_m=self.block_m)

        # 2) Blocked causal flash attention -> (M, C) (head merge fused in).
        y = flash_attention(qkv3, batch=B, seq_len=T, num_heads=H, head_dim=D,
                            heads_per_step=self.hb, causal=self.causal,
                            out_dtype=x.dtype,
                            block_q=self.block_q, block_kv=self.block_kv)

        # 3) Output projection: plain lane-dense (M, C) @ (C, C) matmul.
        out = out_projection(y, self.w_proj, self.b_proj2, block_m=self.block_m)

        # attn_dropout / resid_dropout with p=0.0 -> identity.
        return out.reshape(B, T, C)


# ----------------------------- Reference (JAX) -------------------------------
def reference_forward(mod, x):
    B, T, C = x.shape
    H, D = mod.n_head, C // mod.n_head
    qkv = x.reshape(B * T, C) @ mod.w_attn + mod.b_attn
    q, k, v = jnp.split(qkv.reshape(B, T, 3 * C), 3, axis=2)
    q = q.reshape(B, T, H, D).transpose(0, 2, 1, 3)
    k = k.reshape(B, T, H, D).transpose(0, 2, 1, 3)
    v = v.reshape(B, T, H, D).transpose(0, 2, 1, 3)
    s = jnp.einsum("bhqd,bhkd->bhqk", q, k) / math.sqrt(D)
    if mod.causal:
        mask = jnp.tril(jnp.ones((T, T), bool))
        s = jnp.where(mask[None, None], s, -1e30)
    p = jax.nn.softmax(s, axis=-1)
    y = jnp.einsum("bhqk,bhkd->bhqd", p, v)
    y = y.transpose(0, 2, 1, 3).reshape(B * T, C)
    y = y @ mod.w_proj + mod.b_proj
    return y.reshape(B, T, C)


if __name__ == "__main__":
    # Small config: n_embd=128, n_head=2 -> head_dim=64 (realistic head width),
    # T=256 with 128x128 attention tiles so the multi-block online softmax,
    # the causal tile skip, and both masked/unmasked paths are all exercised.
    B, T, C, H = 2, 256, 128, 2
    key = jax.random.PRNGKey(0)
    kx, kp = jax.random.split(key)
    x = jax.random.normal(kx, (B, T, C), jnp.float32)

    mod = CausalSelfFA3AttentionPallas(n_embd=C, n_head=H, causal=True,
                                       bias=True, dropout=0.0, key=kp,
                                       block_q=128, block_kv=128)

    y = jax.block_until_ready(mod(x))
    y_ref = reference_forward(mod, x)

    assert y.shape == (B, T, C)
    # Tolerance accounts for pl.reciprocal(approx=True) in the softmax
    # normalization (everything else accumulates in f32).
    assert jnp.allclose(y, y_ref, atol=5e-3, rtol=5e-3), "mismatch vs reference"

    print("KERNEL_OK")
</pallas_src>

<mosaic_0001>
module attributes {stable_mosaic.version = 11 : i64} {
  func.func @_qkv_proj_kernel(%arg0: i32, %arg1: memref<256x128xf32, #tpu.memory_space<vmem>>, %arg2: memref<3x128x128xf32, #tpu.memory_space<vmem>>, %arg3: memref<3x1x128xf32, #tpu.memory_space<vmem>>, %arg4: memref<6x256x64xf32, #tpu.memory_space<vmem>>) attributes {dimension_semantics = [#tpu.dimension_semantics<parallel>], iteration_bounds = array<i64: 2>, scalar_prefetch = 0 : i64, scratch_operands = 0 : i64, tpu.core_type = #tpu.core_type<tc>, window_params = [{transform_indices = @transform_0, window_bounds = array<i64: 256, 128>}, {pipeline_mode = #tpu.pipeline_mode<synchronous>, transform_indices = @transform_1, window_bounds = array<i64: 3, 128, 128>}, {pipeline_mode = #tpu.pipeline_mode<synchronous>, transform_indices = @transform_2, window_bounds = array<i64: 3, 1, 128>}, {transform_indices = @transform_3, window_bounds = array<i64: 6, 256, 64>}]} {
    %c0 = arith.constant 0 : index
    %c0_0 = arith.constant 0 : index
    %0 = vector.load %arg1[%c0, %c0_0] : memref<256x128xf32, #tpu.memory_space<vmem>>, vector<256x128xf32>
    %c0_1 = arith.constant 0 : index
    %c0_2 = arith.constant 0 : index
    %c0_3 = arith.constant 0 : index
    %1 = vector.load %arg2[%c0_1, %c0_2, %c0_3] : memref<3x128x128xf32, #tpu.memory_space<vmem>>, vector<1x128x128xf32>
    %2 = vector.shape_cast %1 : vector<1x128x128xf32> to vector<128x128xf32>
    %cst = arith.constant dense<0.000000e+00> : vector<256x128xf32>
    %3 = tpu.matmul %0, %2, %cst {dimension_numbers = #tpu.dot_dimension_numbers<[1], [0], [0], [1], [0, 0, 1, 1], [], []>} : vector<256x128xf32>, vector<128x128xf32>, vector<256x128xf32> -> vector<256x128xf32>
    %c0_4 = arith.constant 0 : index
    %c0_5 = arith.constant 0 : index
    %c0_6 = arith.constant 0 : index
    %4 = vector.load %arg3[%c0_4, %c0_5, %c0_6] : memref<3x1x128xf32, #tpu.memory_space<vmem>>, vector<1x1x128xf32>
    %5 = vector.shape_cast %4 : vector<1x1x128xf32> to vector<1x128xf32>
    %6 = vector.broadcast %5 : vector<1x128xf32> to vector<256x128xf32>
    %7 = arith.addf %3, %6 : vector<256x128xf32>
    %8 = vector.extract_strided_slice %7 {offsets = [0, 0], sizes = [256, 64], strides = [1, 1]} : vector<256x128xf32> to vector<256x64xf32>
    %c0_7 = arith.constant 0 : index
    %c0_8 = arith.constant 0 : index
    %c0_9 = arith.constant 0 : index
    %9 = vector.load %arg4[%c0_7, %c0_8, %c0_9] : memref<6x256x64xf32, #tpu.memory_space<vmem>>, vector<1x256x64xf32>
    %10 = vector.shape_cast %9 : vector<1x256x64xf32> to vector<256x64xf32>
    %11 = vector.shape_cast %8 : vector<256x64xf32> to vector<1x256x64xf32>
    tpu.vector_store %arg4[%c0_7, %c0_8, %c0_9], %11 {strides = array<i32>} : memref<6x256x64xf32, #tpu.memory_space<vmem>>, vector<1x256x64xf32>,
    %12 = vector.extract_strided_slice %7 {offsets = [0, 64], sizes = [256, 64], strides = [1, 1]} : vector<256x128xf32> to vector<256x64xf32>
    %c1 = arith.constant 1 : index
    %c0_10 = arith.constant 0 : index
    %c0_11 = arith.constant 0 : index
    %13 = vector.load %arg4[%c1, %c0_10, %c0_11] : memref<6x256x64xf32, #tpu.memory_space<vmem>>, vector<1x256x64xf32>
    %14 = vector.shape_cast %13 : vector<1x256x64xf32> to vector<256x64xf32>
    %15 = vector.shape_cast %12 : vector<256x64xf32> to vector<1x256x64xf32>
    tpu.vector_store %arg4[%c1, %c0_10, %c0_11], %15 {strides = array<i32>} : memref<6x256x64xf32, #tpu.memory_space<vmem>>, vector<1x256x64xf32>,
    %c1_12 = arith.constant 1 : index
    %c0_13 = arith.constant 0 : index
    %c0_14 = arith.constant 0 : index
    %16 = vector.load %arg2[%c1_12, %c0_13, %c0_14] : memref<3x128x128xf32, #tpu.memory_space<vmem>>, vector<1x128x128xf32>
    %17 = vector.shape_cast %16 : vector<1x128x128xf32> to vector<128x128xf32>
    %cst_15 = arith.constant dense<0.000000e+00> : vector<256x128xf32>
    %18 = tpu.matmul %0, %17, %cst_15 {dimension_numbers = #tpu.dot_dimension_numbers<[1], [0], [0], [1], [0, 0, 1, 1], [], []>} : vector<256x128xf32>, vector<128x128xf32>, vector<256x128xf32> -> vector<256x128xf32>
    %c1_16 = arith.constant 1 : index
    %c0_17 = arith.constant 0 : index
    %c0_18 = arith.constant 0 : index
    %19 = vector.load %arg3[%c1_16, %c0_17, %c0_18] : memref<3x1x128xf32, #tpu.memory_space<vmem>>, vector<1x1x128xf32>
    %20 = vector.shape_cast %19 : vector<1x1x128xf32> to vector<1x128xf32>
    %21 = vector.broadcast %20 : vector<1x128xf32> to vector<256x128xf32>
    %22 = arith.addf %18, %21 : vector<256x128xf32>
    %23 = vector.extract_strided_slice %22 {offsets = [0, 0], sizes = [256, 64], strides = [1, 1]} : vector<256x128xf32> to vector<256x64xf32>
    %c2 = arith.constant 2 : index
    %c0_19 = arith.constant 0 : index
    %c0_20 = arith.constant 0 : index
    %24 = vector.load %arg4[%c2, %c0_19, %c0_20] : memref<6x256x64xf32, #tpu.memory_space<vmem>>, vector<1x256x64xf32>
    %25 = vector.shape_cast %24 : vector<1x256x64xf32> to vector<256x64xf32>
    %26 = vector.shape_cast %23 : vector<256x64xf32> to vector<1x256x64xf32>
    tpu.vector_store %arg4[%c2, %c0_19, %c0_20], %26 {strides = array<i32>} : memref<6x256x64xf32, #tpu.memory_space<vmem>>, vector<1x256x64xf32>,
    %27 = vector.extract_strided_slice %22 {offsets = [0, 64], sizes = [256, 64], strides = [1, 1]} : vector<256x128xf32> to vector<256x64xf32>
    %c3 = arith.constant 3 : index
    %c0_21 = arith.constant 0 : index
    %c0_22 = arith.constant 0 : index
    %28 = vector.load %arg4[%c3, %c0_21, %c0_22] : memref<6x256x64xf32, #tpu.memory_space<vmem>>, vector<1x256x64xf32>
    %29 = vector.shape_cast %28 : vector<1x256x64xf32> to vector<256x64xf32>
    %30 = vector.shape_cast %27 : vector<256x64xf32> to vector<1x256x64xf32>
    tpu.vector_store %arg4[%c3, %c0_21, %c0_22], %30 {strides = array<i32>} : memref<6x256x64xf32, #tpu.memory_space<vmem>>, vector<1x256x64xf32>,
    %c2_23 = arith.constant 2 : index
    %c0_24 = arith.constant 0 : index
    %c0_25 = arith.constant 0 : index
    %31 = vector.load %arg2[%c2_23, %c0_24, %c0_25] : memref<3x128x128xf32, #tpu.memory_space<vmem>>, vector<1x128x128xf32>
    %32 = vector.shape_cast %31 : vector<1x128x128xf32> to vector<128x128xf32>
    %cst_26 = arith.constant dense<0.000000e+00> : vector<256x128xf32>
    %33 = tpu.matmul %0, %32, %cst_26 {dimension_numbers = #tpu.dot_dimension_numbers<[1], [0], [0], [1], [0, 0, 1, 1], [], []>} : vector<256x128xf32>, vector<128x128xf32>, vector<256x128xf32> -> vector<256x128xf32>
    %c2_27 = arith.constant 2 : index
    %c0_28 = arith.constant 0 : index
    %c0_29 = arith.constant 0 : index
    %34 = vector.load %arg3[%c2_27, %c0_28, %c0_29] : memref<3x1x128xf32, #tpu.memory_space<vmem>>, vector<1x1x128xf32>
    %35 = vector.shape_cast %34 : vector<1x1x128xf32> to vector<1x128xf32>
    %36 = vector.broadcast %35 : vector<1x128xf32> to vector<256x128xf32>
    %37 = arith.addf %33, %36 : vector<256x128xf32>
    %38 = vector.extract_strided_slice %37 {offsets = [0, 0], sizes = [256, 64], strides = [1, 1]} : vector<256x128xf32> to vector<256x64xf32>
    %c4 = arith.constant 4 : index
    %c0_30 = arith.constant 0 : index
    %c0_31 = arith.constant 0 : index
    %39 = vector.load %arg4[%c4, %c0_30, %c0_31] : memref<6x256x64xf32, #tpu.memory_space<vmem>>, vector<1x256x64xf32>
    %40 = vector.shape_cast %39 : vector<1x256x64xf32> to vector<256x64xf32>
    %41 = vector.shape_cast %38 : vector<256x64xf32> to vector<1x256x64xf32>
    tpu.vector_store %arg4[%c4, %c0_30, %c0_31], %41 {strides = array<i32>} : memref<6x256x64xf32, #tpu.memory_space<vmem>>, vector<1x256x64xf32>,
    %42 = vector.extract_strided_slice %37 {offsets = [0, 64], sizes = [256, 64], strides = [1, 1]} : vector<256x128xf32> to vector<256x64xf32>
    %c5 = arith.constant 5 : index
    %c0_32 = arith.constant 0 : index
    %c0_33 = arith.constant 0 : index
    %43 = vector.load %arg4[%c5, %c0_32, %c0_33] : memref<6x256x64xf32, #tpu.memory_space<vmem>>, vector<1x256x64xf32>
    %44 = vector.shape_cast %43 : vector<1x256x64xf32> to vector<256x64xf32>
    %45 = vector.shape_cast %42 : vector<256x64xf32> to vector<1x256x64xf32>
    tpu.vector_store %arg4[%c5, %c0_32, %c0_33], %45 {strides = array<i32>} : memref<6x256x64xf32, #tpu.memory_space<vmem>>, vector<1x256x64xf32>,
    return
  }
  func.func @transform_0(%arg0: i32) -> (i32, i32) {
    %c0_i32 = arith.constant 0 : i32
    %c0_i32_0 = arith.constant 0 : i32
    return %arg0, %c0_i32 : i32, i32
  }
  func.func @transform_1(%arg0: i32) -> (i32, i32, i32) {
    %c0_i32 = arith.constant 0 : i32
    %c0_i32_0 = arith.constant 0 : i32
    %c0_i32_1 = arith.constant 0 : i32
    %c0_i32_2 = arith.constant 0 : i32
    return %c0_i32, %c0_i32_0, %c0_i32_1 : i32, i32, i32
  }
  func.func @transform_2(%arg0: i32) -> (i32, i32, i32) {
    %c0_i32 = arith.constant 0 : i32
    %c0_i32_0 = arith.constant 0 : i32
    %c0_i32_1 = arith.constant 0 : i32
    %c0_i32_2 = arith.constant 0 : i32
    return %c0_i32, %c0_i32_0, %c0_i32_1 : i32, i32, i32
  }
  func.func @transform_3(%arg0: i32) -> (i32, i32, i32) {
    %c0_i32 = arith.constant 0 : i32
    %c0_i32_0 = arith.constant 0 : i32
    %c0_i32_1 = arith.constant 0 : i32
    return %c0_i32, %arg0, %c0_i32_0 : i32, i32, i32
  }
}

</mosaic_0001>

<bundles_post_ra>
// kernel: tpu_custom_call.1
= control target key start
LH: loop header
LB: loop body
LE: loop exit
PB: predicated region body
PF: predicated region fallthrough
CT: control target
= control target key end

     0   :  { %8 = vsyncpa [#allocation3], 0  ;;  %s5018_s0 = inlined_call_operand.hbm [shape: f32[512,128], index: 0, kind: input, shape index: {}]   ;;  %s5019_s1 = inlined_call_operand.hbm [shape: f32[3,128,128], index: 1, kind: input, shape index: {}]   ;;  %s5020_s2 = inlined_call_operand.hbm [shape: f32[3,1,128], index: 2, kind: input, shape index: {}]   ;;  %s5021_s3 = inlined_call_operand.vmem [shape: f32[6,512,64], index: 3, kind: output, shape index: {}]  }
   0x1   :  { %10 = vsyncpa [#allocation3 + $0x1], 0 }
   0x2   :  { %11 = vsyncpa [#allocation5], 0  ;;  %s3362_s12 = smov 0   ;;  %s3364_s13 = smov 0  }
   0x3   :  { %s3366_s14 = smov 0   ;;  %s3368_s15 = smov 0  }
   0x4 LB: > { %s3381_s16 = sadd.s32 4294967295, %s3332_s15   ;;  %p37_p0 = scmp.ne.s32.totalorder %s3324_s13, %s3320_s12  ;;  %s3332_s15 = sphi %s3368_s15, %s5038_s15   ;;  %s3328_s14 = sphi %s3366_s14, %s5037_s14   ;;  %s3324_s13 = sphi %s3364_s13, %s5036_s13   ;;  %s3320_s12 = sphi %s3362_s12, %s5035_s12  }
   0x5   : > { %p5022_p1 = scmp.eq.s32.totalorder %s3381_s16, 0  ;;  %p2466_p3 = scmp.ge.s32.totalorder %s3332_s15, 1 }
   0x6   : > { %p116_p4 = scmp.lt.s32.totalorder %s3332_s15, 3  ;;  %s3334_s19 = smov [#allocation4]  }
   0x7   : > { %p3390_p5 = por %p5022_p1, %p37_p0  ;;  %s128_s20 = sshll.u32 %s3334_s19, 4  ;;  %s129_s20 = int_to_ptr.vmem [resolvable:$true] %s128_s20 }
   0x8   : > { %p3394_p6 = pnand %p2466_p3, %p116_p4  ;;  %s3335_s22 = smov [#allocation6]  }
   0x9   : > { %s5025_s17 = scalar_select %p3390_p5, 1, 0 }
   0xa   : > { %s5026_s18 = scalar_select %p3394_p6, 1, 0 }
   0xb   : > { %p3153_p7 = pneg %p3394_p6  ;;  %s141_s23 = sshll.u32 %s3335_s22, 4  ;;  %s3406_s23 = int_to_ptr.vmem [resolvable:$true] %s141_s23 }
   0xc   : > { %s3208_s26 = scalar_lea.hbm %s5019_s1, 6144 }
   0xd   : > { %p3402_p8 = pnand %p3153_p7, %p5022_p1  ;;  %p3209_p9 = scmp.ne.s32.totalorder %s5019_s1, %s3208_s26 }
   0xe   : > { %p3215_p13 = scmp.lt.u32.totalorder %s3208_s26, %s5019_s1 }
   0xf   : > { %p3210_p10 = pneg %p3402_p8 }
  0x11   : > { %p3211_p11 = pnand %p3210_p10, %p3209_p9 }
  0x13   : > { %p3212_p12 = pneg %p3211_p11 }
  0x15   : > { %p3217_p0 = pnand %p3215_p13, %p3212_p12 }
  0x17   : > { %3220 = shalt.err (!%p3217_p0)
}
  0x18   : > { %s3221_s4 = scalar_lea.vmem %s129_s20, 6144  ;;  %p3229_p1 = scmp.lt.s32.totalorder %s129_s20, %s129_s20 }
  0x19   : > { %p3222_p3 = scmp.ne.s32.totalorder %s129_s20, %s3221_s4  ;;  %p3230_p2 = scmp.lt.s32.totalorder %s3221_s4, %s3221_s4 }
  0x1b   : > { %p3224_p4 = pnand %p3222_p3, %p3210_p10  ;;  %p3231_p5 = por %p3230_p2, %p3229_p1 }
  0x1d   : > { %p3225_p7 = pneg %p3224_p4 }
  0x1f   : > { %p3232_p6 = pnand %p3231_p5, %p3225_p7 }
  0x21   : > { %3235 = shalt.err (!%p3232_p6)
}
  0x22   : > { %s3336_s5 = smov 128   ;;  %s3337_s6 = smov 8  }
  0x23   : > { %3156 = dma.hbm_to_vmem [thread:$0]  (!%p3402_p8), %s5019_s1, 6144, %s129_s20, [#allocation5], %s3336_s5, %s3336_s5, %s3337_s6  }
  0x24   : > { %s3236_s11 = scalar_lea.hbm %s5020_s2, 48 }
  0x25   : > { %p3237_p1 = scmp.ne.s32.totalorder %s5020_s2, %s3236_s11  ;;  %p3243_p6 = scmp.lt.u32.totalorder %s3236_s11, %s5020_s2 }
  0x27   : > { %p3239_p2 = pnand %p3237_p1, %p3210_p10 }
  0x29   : > { %p3240_p5 = pneg %p3239_p2 }
  0x2b   : > { %p3245_p9 = pnand %p3243_p6, %p3240_p5 }
  0x2d   : > { %3248 = shalt.err (!%p3245_p9)
}
  0x2e   : > { %s3249_s20 = scalar_lea.vmem %s3406_s23, 48  ;;  %s3256_s25 = scalar_lea.vmem %s3406_s23, 64 }
  0x2f   : > { %p3250_p11 = scmp.ne.s32.totalorder %s3406_s23, %s3249_s20  ;;  %p3257_p0 = scmp.lt.s32.totalorder %s3406_s23, %s3406_s23 }
  0x30   : > { %p3258_p3 = scmp.lt.s32.totalorder %s3256_s25, %s3249_s20 }
  0x31   : > { %p3252_p12 = pnand %p3250_p11, %p3210_p10 }
  0x32   : > { %p3259_p4 = por %p3258_p3, %p3257_p0 }
  0x33   : > { %p3253_p13 = pneg %p3252_p12 }
  0x35   : > { %p3260_p7 = pnand %p3259_p4, %p3253_p13 }
  0x37   : > { %3263 = shalt.err (!%p3260_p7)
}
  0x38   : > { %s3338_s26 = smov 16   ;;  %s3339_s27 = smov 1  }
  0x39   : > { %3159 = dma.hbm_to_vmem [thread:$0]  (!%p3402_p8), %s5020_s2, 48, %s3406_s23, [#allocation5], %s3338_s26, %s3338_s26, %s3339_s27  }
  0x3a   : > { %s3460_s30 = sadd.s32 1, %s3332_s15   ;;  %s24_s7 = sadd.s32 1, %s3328_s14 }
  0x3b   : > { %s21_s4 = ssub.s32 %s3332_s15, %s3460_s30  ;;  %p31_p1 = scmp.ne.s32.totalorder %s3328_s14, %s3324_s13 }
  0x3c   : > { %p22_p10 = scmp.eq.s32.totalorder %s21_s4, 0  ;;  %p32_p2 = scmp.eq.s32.totalorder %s3332_s15, 0 }
  0x3d   : > { %p3166_p5 = scmp.lt.s32.totalorder %s3332_s15, 2  ;;  %p5028_p9 = scmp.eq.s32.totalorder %s3381_s16, 1 }
  0x3e   : > { %s3470_s8 = scalar_select %p22_p10, %s3328_s14, %s24_s7  }
  0x3f   : > { %p33_p6 = por %p32_p2, %p31_p1  ;;  %p3474_p11 = por %p5028_p9, %p31_p1 }
  0x40   : > { %s155_s21 = sand.u32 1, %s3328_s14   ;;  %s2644_s10 = sshll.u32 %s3332_s15, 12 }
  0x41   : > { %s2470_s23 = sshll.u32 %s155_s21, 8  ;;  %s3483_s19 = scalar_lea.hbm %s5018_s0, %s2644_s10 }
  0x42   : > { %s159_s22 = scalar_lea.vmem [#allocation2], %s2470_s23  ;;  %p3485_p8 = pnand %p3166_p5, %p33_p6 }
  0x43   : > { %s166_s24 = sshll.u32 %s159_s22, 4  ;;  %s3491_s15 = scalar_lea.sflag [#allocation3], %s155_s21  ;;  %s3489_s24 = int_to_ptr.vmem [resolvable:$true] %s166_s24 }
  0x44   : > { %s3264_s25 = scalar_lea.hbm %s3483_s19, 4096  ;;  %p3266_p13 = pneg %p3485_p8 }
  0x45   : > { %p3265_p12 = scmp.ne.s32.totalorder %s3483_s19, %s3264_s25  ;;  %s3269_s28 = scalar_lea.hbm %s5018_s0, 8192 }
  0x46   : > { %p3270_p4 = scmp.lt.u32.totalorder %s3483_s19, %s5018_s0  ;;  %p3271_p7 = scmp.lt.u32.totalorder %s3269_s28, %s3264_s25 }
  0x47   : > { %p3267_p0 = pnand %p3266_p13, %p3265_p12  ;;  %p3273_p1 = scmp.lt.u32.totalorder %s3264_s25, %s3483_s19 }
  0x48   : > { %p3272_p10 = por %p3271_p7, %p3270_p4 }
  0x49   : > { %p3268_p3 = pneg %p3267_p0 }
  0x4a   : > { %p3274_p2 = por %p3273_p1, %p3272_p10 }
  0x4c   : > { %p3275_p5 = pnand %p3274_p2, %p3268_p3 }
  0x4e   : > { %3278 = shalt.err (!%p3275_p5)
}
  0x4f   : > { %s3279_s7 = scalar_lea.vmem %s3489_s24, 4096  ;;  %s3340_s21 = smov [#allocation2]  }
  0x50   : > { %p3280_p6 = scmp.ne.s32.totalorder %s3489_s24, %s3279_s7  ;;  %s3284_s10 = sshll.u32 %s3340_s21, 4  ;;  %s3285_s10 = int_to_ptr.vmem [resolvable:$false] %s3284_s10 }
  0x51   : > { %s3286_s23 = scalar_lea.vmem %s3285_s10, 8192  ;;  %p3287_p0 = scmp.lt.s32.totalorder %s3489_s24, %s3285_s10 }
  0x52   : > { %p3282_p9 = pnand %p3280_p6, %p3266_p13  ;;  %p3288_p4 = scmp.lt.s32.totalorder %s3286_s23, %s3279_s7 }
  0x54   : > { %p3283_p12 = pneg %p3282_p9  ;;  %p3289_p7 = por %p3288_p4, %p3287_p0 }
  0x56   : > { %p3290_p10 = pnand %p3289_p7, %p3283_p12 }
  0x58   : > { %3293 = shalt.err (!%p3290_p10)
}
  0x59   : > { %3163 = dma.hbm_to_vmem [thread:$0]  (!%p3485_p8), %s3483_s19, 4096, %s3489_s24, %s3491_s15, %s3336_s5, %s3336_s5, %s3337_s6  }
  0x5a   : > { %p5031_p13 = scmp.ne.s32.totalorder %s5026_s18, 0 }
  0x5b   : > { %s3525_s11 = sand.u32 (!%p5031_p13), 1, %s3324_s13   ;;  %p5032_p3 = scmp.ne.s32.totalorder (!%p5031_p13), %s5025_s17, 0 }
  0x5c   : > { %178 = sbr.rel (%p5031_p13) target bundleno = 664 (0x298), region = 32  ;;  %s2474_s12 = sshll.u32 (!%p5031_p13), %s3525_s11, 8 }
  0x5d   : > { %s181_s22 = scalar_lea.sflag (!%p5031_p13), [#allocation3], %s3525_s11  ;;  %s3529_s25 = scalar_lea.vmem (!%p5031_p13), [#allocation2], %s2474_s12 }
  0x63   : > { %3311 = dma.done.wait (%p5032_p3), %s181_s22, 4096  }
  0x64   : > { %3313 = vsyncadd (%p5032_p3), %s181_s22, 4294963200  ;;  %p5033_p8 = scmp.eq.s32.totalorder %s3381_s16, 0 }
  0x66   : > { %3315 = dma.done.wait (%p5033_p8), [#allocation5], 6192   ;;  %p5034_p1 = pmov %p5033_p8 }
  0x67   : > { %v248_v0 = vld [vmem:[#allocation4] sm:$0xff]  ;;  %v249_v1 = vld [vmem:[#allocation4 + $0x8] sm:$0xff]  ;;  %v250_v2 = vld [vmem:[#allocation4 + $0x10] sm:$0xff]  ;;  %s3142_s17 = smul.u32 1536, %s3525_s11  ;;  %vm496_vm0 = vcmask 523264   ;;  %s3341_s5 = smov 64  }
  0x68   : > { %3317 = vsyncadd (%p5034_p1), [#allocation5], 4294961104  ;;  %v3030_v3 = vpack.c.bf16 %v249_v1, %v248_v0  ;;  %v251_v4 = vld [vmem:[#allocation4 + $0x18] sm:$0xff]  ;;  %v252_v6 = vld [vmem:[#allocation4 + $0x20] sm:$0xff]  ;;  %s2645_s6 = sshll.u32 (%p3474_p11), %s3381_s16, 8 }
  0x69   : > { %v3034_v5 = vpack.c.bf16 %v251_v4, %v250_v2  ;;  %v253_v7 = vld [vmem:[#allocation4 + $0x28] sm:$0xff]  ;;  %v3540_v9 = vld [vmem:[%s3529_s25] sm:$0xff]  ;;  %v254_v11 = vld [vmem:[#allocation4 + $0x30] sm:$0xff]  ;;  %s3723_s18 = scalar_lea.vmem [#allocation7], %s3142_s17  ;;  %s4622_s20 = scalar_lea.vmem (%p3474_p11), %s5021_s3, %s2645_s6 }
  0x6a   : > { %3031 = vmatprep.subr.bf16.mxu0 %v3030_v3  ;;  %3126 = vmatprep.subr.bf16.mxu1 %v3030_v3  ;;  %v3038_v8 = vpack.c.bf16 %v253_v7, %v252_v6  ;;  %v3543_v10 = vld [vmem:[%s3529_s25 + $0x80] sm:$0xff]  ;;  %v255_v12 = vld [vmem:[#allocation4 + $0x38] sm:$0xff]  ;;  %v257_v15 = vld [vmem:[#allocation4 + $0x48] sm:$0xff] }
  0x6b   : > { %3033 = vmatpush3.bf16.msra.mxu0 %v3030_v3  ;;  %3134 = vmatpush3.bf16.msra.mxu1 %v3030_v3  ;;  %v3042_v13 = vpack.c.bf16 %v255_v12, %v254_v11  ;;  %v256_v14 = vld [vmem:[#allocation4 + $0x40] sm:$0xff]  ;;  %v258_v17 = vld [vmem:[#allocation4 + $0x50] sm:$0xff]  ;;  %v259_v18 = vld [vmem:[#allocation4 + $0x58] sm:$0xff] }
  0x6c   : > { %3035 = vmatprep.subr.bf16.mxu0 %v3034_v5  ;;  %3127 = vmatprep.subr.bf16.mxu1 %v3034_v5  ;;  %v3046_v16 = vpack.c.bf16 %v257_v15, %v256_v14  ;;  %v3050_v19 = vpack.c.bf16 %v259_v18, %v258_v17  ;;  %v260_v20 = vld [vmem:[#allocation4 + $0x60] sm:$0xff]  ;;  %v261_v21 = vld [vmem:[#allocation4 + $0x68] sm:$0xff]  ;;  %v262_v23 = vld [vmem:[#allocation4 + $0x70] sm:$0xff] }
  0x6d   : > { %2822 = vmatprep.mubr.f32.mxu0 %v3540_v9  ;;  %2846 = vmatprep.mubr.f32.mxu1 %v3543_v10  ;;  %v3054_v22 = vpack.c.bf16 %v261_v21, %v260_v20  ;;  %v263_v24 = vld [vmem:[#allocation4 + $0x78] sm:$0xff]  ;;  %v691_v26 = vld [vmem:[#allocation4 + $0x80] sm:$0xff]  ;;  %v692_v27 = vld [vmem:[#allocation4 + $0x88] sm:$0xff] }
  0x6e   : > { %v3058_v25 = vpack.c.bf16 %v263_v24, %v262_v23  ;;  %v1135_v28 = vld [vmem:[#allocation4 + $0x100] sm:$0xff]  ;;  %v1136_v29 = vld [vmem:[#allocation4 + $0x108] sm:$0xff]  ;;  %v3062_v30 = vpack.c.bf16 %v692_v27, %v691_v26  ;;  %v693_v32 = vld [vmem:[#allocation4 + $0x90] sm:$0xff] }
  0x6f   : > { %3037 = vmatpush3.bf16.msra.mxu0 %v3034_v5  ;;  %3135 = vmatpush3.bf16.msra.mxu1 %v3034_v5  ;;  %v3094_v31 = vpack.c.bf16 %v1136_v29, %v1135_v28  ;;  %v694_v33 = vld [vmem:[#allocation4 + $0x98] sm:$0xff]  ;;  %v1137_v34 = vld [vmem:[#allocation4 + $0x110] sm:$0xff]  ;;  %v3548_v36 = vld [vmem:[%s3529_s25 + $0x8] sm:$0xff] }
  0x70   : > { %3039 = vmatprep.subr.bf16.mxu0 %v3038_v8  ;;  %3128 = vmatprep.subr.bf16.mxu1 %v3038_v8  ;;  %v1138_v35 = vld [vmem:[#allocation4 + $0x118] sm:$0xff]  ;;  %v3551_v37 = vld [vmem:[%s3529_s25 + $0x88] sm:$0xff]  ;;  %v3554_v38 = vld [vmem:[%s3529_s25 + $0x10] sm:$0xff]  ;;  %v3066_v40 = vpack.c.bf16 %v694_v33, %v693_v32 }
  0x71   : > { %v3557_v39 = vld [vmem:[%s3529_s25 + $0x90] sm:$0xff]  ;;  %v695_v41 = vld [vmem:[#allocation4 + $0xa0] sm:$0xff]  ;;  %v3098_v42 = vpack.c.bf16 %v1138_v35, %v1137_v34  ;;  %v696_v43 = vld [vmem:[#allocation4 + $0xa8] sm:$0xff] }
  0x72   : > { %v1139_v44 = vld [vmem:[#allocation4 + $0x120] sm:$0xff]  ;;  %v1140_v45 = vld [vmem:[#allocation4 + $0x128] sm:$0xff]  ;;  %v3563_v46 = vld [vmem:[%s3529_s25 + $0x18] sm:$0xff]  ;;  %v3070_v50 = vpack.c.bf16 %v696_v43, %v695_v41 }
  0x73   : > { %3041 = vmatpush3.bf16.msra.mxu0 %v3038_v8  ;;  %3136 = vmatpush3.bf16.msra.mxu1 %v3038_v8  ;;  %v3567_v47 = vld [vmem:[%s3529_s25 + $0x98] sm:$0xff]  ;;  %v3570_v48 = vld [vmem:[%s3529_s25 + $0x20] sm:$0xff]  ;;  %v697_v51 = vld [vmem:[#allocation4 + $0xb0] sm:$0xff]  ;;  %v3102_v52 = vpack.c.bf16 %v1140_v45, %v1139_v44 }
  0x74   : > { %3043 = vmatprep.subr.bf16.mxu0 %v3042_v13  ;;  %3129 = vmatprep.subr.bf16.mxu1 %v3042_v13  ;;  %v3573_v49 = vld [vmem:[%s3529_s25 + $0xa0] sm:$0xff]  ;;  %v698_v53 = vld [vmem:[#allocation4 + $0xb8] sm:$0xff]  ;;  %v1141_v54 = vld [vmem:[#allocation4 + $0x130] sm:$0xff] }
  0x75   : > { %v1142_v55 = vld [vmem:[#allocation4 + $0x138] sm:$0xff]  ;;  %v3579_v56 = vld [vmem:[%s3529_s25 + $0x28] sm:$0xff]  ;;  %v3586_v58 = vld [vmem:[%s3529_s25 + $0x30] sm:$0xff]  ;;  %v3074_v60 = vpack.c.bf16 %v698_v53, %v697_v51 }
  0x76   : > { %v3583_v57 = vld [vmem:[%s3529_s25 + $0xa8] sm:$0xff]  ;;  %v3589_v59 = vld [vmem:[%s3529_s25 + $0xb0] sm:$0xff]  ;;  %v699_v61 = vld [vmem:[#allocation4 + $0xc0] sm:$0xff]  ;;  %v3106_v62 = vpack.c.bf16 %v1142_v55, %v1141_v54 }
  0x77   : > { %3045 = vmatpush3.bf16.msra.mxu0 %v3042_v13  ;;  %3137 = vmatpush3.bf16.msra.mxu1 %v3042_v13  ;;  %v700_v63 = vld [vmem:[#allocation4 + $0xc8] sm:$0xff]  ;;  %v1143_v0 = vld [vmem:[#allocation4 + $0x140] sm:$0xff]  ;;  %v3595_v2 = vld [vmem:[%s3529_s25 + $0x38] sm:$0xff] }
  0x78   : > { %3047 = vmatprep.subr.bf16.mxu0 %v3046_v16  ;;  %3130 = vmatprep.subr.bf16.mxu1 %v3046_v16  ;;  %v1144_v1 = vld [vmem:[#allocation4 + $0x148] sm:$0xff]  ;;  %v3599_v3 = vld [vmem:[%s3529_s25 + $0xb8] sm:$0xff]  ;;  %v3602_v4 = vld [vmem:[%s3529_s25 + $0x40] sm:$0xff]  ;;  %v3078_v6 = vpack.c.bf16 %v700_v63, %v699_v61 }
  0x79   : > { %v3605_v5 = vld [vmem:[%s3529_s25 + $0xc0] sm:$0xff]  ;;  %v701_v7 = vld [vmem:[#allocation4 + $0xd0] sm:$0xff]  ;;  %v3110_v8 = vpack.c.bf16 %v1144_v1, %v1143_v0  ;;  %v702_v11 = vld [vmem:[#allocation4 + $0xd8] sm:$0xff] }
  0x7a   : > { %v1145_v12 = vld [vmem:[#allocation4 + $0x150] sm:$0xff]  ;;  %v1146_v13 = vld [vmem:[#allocation4 + $0x158] sm:$0xff]  ;;  %v3611_v14 = vld [vmem:[%s3529_s25 + $0x48] sm:$0xff]  ;;  %v3082_v18 = vpack.c.bf16 %v702_v11, %v701_v7 }
  0x7b   : > { %3049 = vmatpush3.bf16.msra.mxu0 %v3046_v16  ;;  %3138 = vmatpush3.bf16.msra.mxu1 %v3046_v16  ;;  %v3615_v15 = vld [vmem:[%s3529_s25 + $0xc8] sm:$0xff]  ;;  %v3618_v16 = vld [vmem:[%s3529_s25 + $0x50] sm:$0xff]  ;;  %v3114_v20 = vpack.c.bf16 %v1146_v13, %v1145_v12  ;;  %v3627_v24 = vld [vmem:[%s3529_s25 + $0x58] sm:$0xff] }
  0x7c   : > { %3051 = vmatprep.subr.bf16.mxu0 %v3050_v19  ;;  %3131 = vmatprep.subr.bf16.mxu1 %v3050_v19  ;;  %v3621_v17 = vld [vmem:[%s3529_s25 + $0xd0] sm:$0xff]  ;;  %v704_v21 = vld [vmem:[#allocation4 + $0xe8] sm:$0xff]  ;;  %v3634_v26 = vld [vmem:[%s3529_s25 + $0x60] sm:$0xff] }
  0x7d   : > { %v1148_v23 = vld [vmem:[#allocation4 + $0x168] sm:$0xff]  ;;  %v3637_v27 = vld [vmem:[%s3529_s25 + $0xe0] sm:$0xff]  ;;  %v705_v29 = vld [vmem:[#allocation4 + $0xf0] sm:$0xff] }
  0x7e   : > { %v1149_v32 = vld [vmem:[#allocation4 + $0x170] sm:$0xff]  ;;  %v1150_v33 = vld [vmem:[#allocation4 + $0x178] sm:$0xff]  ;;  %v229_v34 = vld [vmem:[%s3529_s25 + $0x68] sm:$0xff] }
  0x7f   : > { %3053 = vmatpush3.bf16.msra.mxu0 %v3050_v19  ;;  %3139 = vmatpush3.bf16.msra.mxu1 %v3050_v19  ;;  %v703_v19 = vld [vmem:[#allocation4 + $0xe0] sm:$0xff]  ;;  %v3645_v35 = vld [vmem:[%s3529_s25 + $0xe8] sm:$0xff]  ;;  %v3649_v41 = vld [vmem:[%s3529_s25 + $0xf0] sm:$0xff]  ;;  %v3122_v43 = vpack.c.bf16 %v1150_v33, %v1149_v32 }
  0x80   : > { %3055 = vmatprep.subr.bf16.mxu0 %v3054_v22  ;;  %3132 = vmatprep.subr.bf16.mxu1 %v3054_v22  ;;  %v3086_v28 = vpack.c.bf16 %v704_v21, %v703_v19  ;;  %v231_v44 = vld [vmem:[%s3529_s25 + $0x78] sm:$0xff] }
  0x81   : > { %v3655_v45 = vld [vmem:[%s3529_s25 + $0xf8] sm:$0xff] }
  0x83   : > { %3057 = vmatpush3.bf16.msra.mxu0 %v3054_v22  ;;  %3140 = vmatpush3.bf16.msra.mxu1 %v3054_v22  ;;  %v1147_v22 = vld [vmem:[#allocation4 + $0x160] sm:$0xff] }
  0x84   : > { %3059 = vmatprep.subr.bf16.mxu0 %v3058_v25  ;;  %3133 = vmatprep.subr.bf16.mxu1 %v3058_v25 }
  0x87   : > { %3061 = vmatpush3.bf16.msra.mxu0 %v3058_v25  ;;  %3141 = vmatpush3.bf16.msra.mxu1 %v3058_v25  ;;  %v3631_v25 = vld [vmem:[%s3529_s25 + $0xd8] sm:$0xff] }
  0x88   : > { %3063 = vmatprep.subr.bf16.mxu1 %v3062_v30  ;;  %3095 = vmatprep.subr.bf16.mxu0 %v3094_v31 }
  0x8a   : > { %2823 = vmatmul.mubr.f32.vlgmr.msra.gmra.mrb[0].mxu0 %v3548_v36  ;;  %2847 = vmatmul.mubr.f32.vlgmr.msra.gmra.mrb[0].mxu1 %v3551_v37 }
  0x8b   : > { %2825 = vmatprep.mubr.f32.mxu0 %v3554_v38  ;;  %2849 = vmatprep.mubr.f32.mxu1 %v3557_v39 }
  0x8c   : > { %3065 = vmatpush3.bf16.msra.mxu1 %v3062_v30  ;;  %3097 = vmatpush3.bf16.msra.mxu0 %v3094_v31  ;;  %v3118_v30 = vpack.c.bf16 %v1148_v23, %v1147_v22  ;;  %v706_v31 = vld [vmem:[#allocation4 + $0xf8] sm:$0xff] }
  0x8d   : > { %3067 = vmatprep.subr.bf16.mxu1 %v3066_v40  ;;  %3099 = vmatprep.subr.bf16.mxu0 %v3098_v42 }
  0x8e   : > { %2826 = vmatmul.mubr.f32.gmra.mrb[2].mxu0 %v3563_v46  ;;  %2850 = vmatmul.mubr.f32.gmra.mrb[2].mxu1 %v3567_v47 }
  0x8f   : > { %2828 = vmatprep.mubr.f32.mxu0 %v3570_v48  ;;  %2852 = vmatprep.mubr.f32.mxu1 %v3573_v49 }
  0x90   : > { %3069 = vmatpush3.bf16.msra.mxu1 %v3066_v40  ;;  %3101 = vmatpush3.bf16.msra.mxu0 %v3098_v42  ;;  %v230_v40 = vld [vmem:[%s3529_s25 + $0x70] sm:$0xff]  ;;  %v3090_v42 = vpack.c.bf16 %v706_v31, %v705_v29 }
  0x91   : > { %3071 = vmatprep.subr.bf16.mxu1 %v3070_v50  ;;  %3103 = vmatprep.subr.bf16.mxu0 %v3102_v52 }
  0x92   : > { %2829 = vmatmul.mubr.f32.gmra.mrb[4].mxu0 %v3579_v56  ;;  %2853 = vmatmul.mubr.f32.gmra.mrb[4].mxu1 %v3583_v57 }
  0x93   : > { %2831 = vmatprep.mubr.f32.mxu0 %v3586_v58  ;;  %2855 = vmatprep.mubr.f32.mxu1 %v3589_v59 }
  0x94   : > { %3073 = vmatpush3.bf16.msra.mxu1 %v3070_v50  ;;  %3105 = vmatpush3.bf16.msra.mxu0 %v3102_v52 }
  0x95   : > { %3075 = vmatprep.subr.bf16.mxu1 %v3074_v60  ;;  %3107 = vmatprep.subr.bf16.mxu0 %v3106_v62 }
  0x96   : > { %2832 = vmatmul.mubr.f32.gmra.mrb[6].mxu0 %v3595_v2  ;;  %2856 = vmatmul.mubr.f32.gmra.mrb[6].mxu1 %v3599_v3 }
  0x97   : > { %2834 = vmatprep.mubr.f32.mxu0 %v3602_v4  ;;  %2858 = vmatprep.mubr.f32.mxu1 %v3605_v5 }
  0x98   : > { %3077 = vmatpush3.bf16.msra.mxu1 %v3074_v60  ;;  %3109 = vmatpush3.bf16.msra.mxu0 %v3106_v62 }
  0x99   : > { %3079 = vmatprep.subr.bf16.mxu1 %v3078_v6  ;;  %3111 = vmatprep.subr.bf16.mxu0 %v3110_v8 }
  0x9a   : > { %2835 = vmatmul.mubr.f32.gmra.mrb[8].mxu0 %v3611_v14  ;;  %2859 = vmatmul.mubr.f32.gmra.mrb[8].mxu1 %v3615_v15 }
  0x9b   : > { %2837 = vmatprep.mubr.f32.mxu0 %v3618_v16  ;;  %2861 = vmatprep.mubr.f32.mxu1 %v3621_v17 }
  0x9c   : > { %3081 = vmatpush3.bf16.msra.mxu1 %v3078_v6  ;;  %3113 = vmatpush3.bf16.msra.mxu0 %v3110_v8 }
  0x9d   : > { %3083 = vmatprep.subr.bf16.mxu1 %v3082_v18  ;;  %3115 = vmatprep.subr.bf16.mxu0 %v3114_v20 }
  0x9e   : > { %2838 = vmatmul.mubr.f32.gmra.mrb[10].mxu0 %v3627_v24  ;;  %2862 = vmatmul.mubr.f32.gmra.mrb[10].mxu1 %v3631_v25 }
  0x9f   : > { %2840 = vmatprep.mubr.f32.mxu0 %v3634_v26  ;;  %2864 = vmatprep.mubr.f32.mxu1 %v3637_v27 }
  0xa0   : > { %3085 = vmatpush3.bf16.msra.mxu1 %v3082_v18  ;;  %3117 = vmatpush3.bf16.msra.mxu0 %v3114_v20 }
  0xa1   : > { %3087 = vmatprep.subr.bf16.mxu1 %v3086_v28  ;;  %3119 = vmatprep.subr.bf16.mxu0 %v3118_v30 }
  0xa2   : > { %2841 = vmatmul.mubr.f32.gmra.mrb[12].mxu0 %v229_v34  ;;  %2865 = vmatmul.mubr.f32.gmra.mrb[12].mxu1 %v3645_v35 }
  0xa3   : > { %2843 = vmatprep.mubr.f32.mxu0 %v230_v40  ;;  %2867 = vmatprep.mubr.f32.mxu1 %v3649_v41 }
  0xa4   : > { %3089 = vmatpush3.bf16.msra.mxu1 %v3086_v28  ;;  %3121 = vmatpush3.bf16.msra.mxu0 %v3118_v30 }
  0xa5   : > { %3091 = vmatprep.subr.bf16.mxu1 %v3090_v42  ;;  %3123 = vmatprep.subr.bf16.mxu0 %v3122_v43 }
  0xa6   : > { %2844 = vmatmul.mubr.f32.gmra.mrb[14].mxu0 %v231_v44  ;;  %2868 = vmatmul.mubr.f32.gmra.mrb[14].mxu1 %v3655_v45 }
  0xa7   : > { %2902 = vmatprep.mubr.f32.mxu1 %v3540_v9  ;;  %2982 = vmatprep.mubr.f32.mxu0 %v3540_v9  ;;  %v3717_v9 = vld [vmem:[#allocation6] ss:$0 sm:$0xff] }
  0xa8   : > { %3093 = vmatpush3.bf16.msra.mxu1 %v3090_v42  ;;  %3125 = vmatpush3.bf16.msra.mxu0 %v3122_v43 }
  0xab   : > { %2903 = vmatmul.mubr.f32.vlgmr.msra.gmra.mrb[16].mxu1 %v3548_v36  ;;  %2983 = vmatmul.mubr.f32.vlgmr.msra.gmra.mrb[16].mxu0 %v3548_v36 }
  0xac   : > { %2905 = vmatprep.mubr.f32.mxu1 %v3554_v38  ;;  %2985 = vmatprep.mubr.f32.mxu0 %v3554_v38 }
  0xaf   : > { %2906 = vmatmul.mubr.f32.gmra.mrb[18].mxu1 %v3563_v46  ;;  %2986 = vmatmul.mubr.f32.gmra.mrb[18].mxu0 %v3563_v46 }
  0xb0   : > { %2908 = vmatprep.mubr.f32.mxu1 %v3570_v48  ;;  %2988 = vmatprep.mubr.f32.mxu0 %v3570_v48 }
  0xb3   : > { %2909 = vmatmul.mubr.f32.gmra.mrb[20].mxu1 %v3579_v56  ;;  %2989 = vmatmul.mubr.f32.gmra.mrb[20].mxu0 %v3579_v56 }
  0xb4   : > { %2911 = vmatprep.mubr.f32.mxu1 %v3586_v58  ;;  %2991 = vmatprep.mubr.f32.mxu0 %v3586_v58 }
  0xb7   : > { %2912 = vmatmul.mubr.f32.gmra.mrb[22].mxu1 %v3595_v2  ;;  %2992 = vmatmul.mubr.f32.gmra.mrb[22].mxu0 %v3595_v2 }
  0xb8   : > { %2914 = vmatprep.mubr.f32.mxu1 %v3602_v4  ;;  %2994 = vmatprep.mubr.f32.mxu0 %v3602_v4 }
  0xbb   : > { %2915 = vmatmul.mubr.f32.gmra.mrb[24].mxu1 %v3611_v14  ;;  %2995 = vmatmul.mubr.f32.gmra.mrb[24].mxu0 %v3611_v14 }
  0xbc   : > { %2917 = vmatprep.mubr.f32.mxu1 %v3618_v16  ;;  %2997 = vmatprep.mubr.f32.mxu0 %v3618_v16 }
  0xbf   : > { %2918 = vmatmul.mubr.f32.gmra.mrb[26].mxu1 %v3627_v24  ;;  %2998 = vmatmul.mubr.f32.gmra.mrb[26].mxu0 %v3627_v24 }
  0xc0   : > { %2920 = vmatprep.mubr.f32.mxu1 %v3634_v26  ;;  %3000 = vmatprep.mubr.f32.mxu0 %v3634_v26 }
  0xc3   : > { %2921 = vmatmul.mubr.f32.gmra.mrb[28].mxu1 %v229_v34  ;;  %3001 = vmatmul.mubr.f32.gmra.mrb[28].mxu0 %v229_v34 }
  0xc4   : > { %2923 = vmatprep.mubr.f32.mxu1 %v230_v40  ;;  %3003 = vmatprep.mubr.f32.mxu0 %v230_v40 }
  0xc7   : > { %2924 = vmatmul.mubr.f32.gmra.mrb[30].mxu1 %v231_v44  ;;  %3004 = vmatmul.mubr.f32.gmra.mrb[30].mxu0 %v231_v44 }
  0xc8   : > { %2926 = vmatprep.mubr.f32.mxu1 %v3543_v10  ;;  %3006 = vmatprep.mubr.f32.mxu0 %v3543_v10 }
  0xcb   : > { %2927 = vmatmul.mubr.f32.gmra.mrb[32].mxu1 %v3551_v37  ;;  %3007 = vmatmul.mubr.f32.gmra.mrb[32].mxu0 %v3551_v37 }
  0xcc   : > { %2929 = vmatprep.mubr.f32.mxu1 %v3557_v39  ;;  %3009 = vmatprep.mubr.f32.mxu0 %v3557_v39 }
  0xcf   : > { %2930 = vmatmul.mubr.f32.gmra.mrb[34].mxu1 %v3567_v47  ;;  %3010 = vmatmul.mubr.f32.gmra.mrb[34].mxu0 %v3567_v47 }
  0xd0   : > { %2932 = vmatprep.mubr.f32.mxu1 %v3573_v49  ;;  %3012 = vmatprep.mubr.f32.mxu0 %v3573_v49 }
  0xd3   : > { %2933 = vmatmul.mubr.f32.gmra.mrb[36].mxu1 %v3583_v57  ;;  %3013 = vmatmul.mubr.f32.gmra.mrb[36].mxu0 %v3583_v57 }
  0xd4   : > { %2935 = vmatprep.mubr.f32.mxu1 %v3589_v59  ;;  %3015 = vmatprep.mubr.f32.mxu0 %v3589_v59 }
  0xd7   : > { %2936 = vmatmul.mubr.f32.gmra.mrb[38].mxu1 %v3599_v3  ;;  %3016 = vmatmul.mubr.f32.gmra.mrb[38].mxu0 %v3599_v3 }
  0xd8   : > { %2938 = vmatprep.mubr.f32.mxu1 %v3605_v5  ;;  %3018 = vmatprep.mubr.f32.mxu0 %v3605_v5 }
  0xdb   : > { %2939 = vmatmul.mubr.f32.gmra.mrb[40].mxu1 %v3615_v15  ;;  %3019 = vmatmul.mubr.f32.gmra.mrb[40].mxu0 %v3615_v15 }
  0xdc   : > { %2941 = vmatprep.mubr.f32.mxu1 %v3621_v17  ;;  %3021 = vmatprep.mubr.f32.mxu0 %v3621_v17 }
  0xdf   : > { %2942 = vmatmul.mubr.f32.gmra.mrb[42].mxu1 %v3631_v25  ;;  %3022 = vmatmul.mubr.f32.gmra.mrb[42].mxu0 %v3631_v25 }
  0xe0   : > { %2944 = vmatprep.mubr.f32.mxu1 %v3637_v27  ;;  %3024 = vmatprep.mubr.f32.mxu0 %v3637_v27 }
  0xe3   : > { %2945 = vmatmul.mubr.f32.gmra.mrb[44].mxu1 %v3645_v35  ;;  %3025 = vmatmul.mubr.f32.gmra.mrb[44].mxu0 %v3645_v35 }
  0xe4   : > { %2947 = vmatprep.mubr.f32.mxu1 %v3649_v41  ;;  %3027 = vmatprep.mubr.f32.mxu0 %v3649_v41 }
  0xe7   : > { %2948 = vmatmul.mubr.f32.gmra.mrb[46].mxu1 %v3655_v45  ;;  %3028 = vmatmul.mubr.f32.gmra.mrb[46].mxu0 %v3655_v45 }
 0x15d   : > { %v2824_v10 = vpop.f32.mrb[0].mxu0  ;;  %v2848_v36 = vpop.f32.mrb[0].mxu1 }
 0x15e   : > { %v343_v37 = vadd.f32 %v2824_v10, %v3717_v9  ;;  %v423_v38 = vadd.f32 %v2848_v36, %v3717_v9  ;;  %v337_v39 = vpop.f32.mrb[1].mxu0  ;;  %v417_v46 = vpop.f32.mrb[1].mxu1  ;;  %v3869_v36 = vld [vmem:[#allocation6 + $0x1] ss:$0 sm:$0xff] }
 0x15f   : > { %v338_v47 = vadd.f32 %v3717_v9, %v337_v39  ;;  %v418_v48 = vadd.f32 %v3717_v9, %v417_v46 }
 0x160   : > { %498 = vst.msk [vmem:[%s3723_s18 + $0x8] sm:$0xff] %vm496_vm0, %v343_v37  ;;  %514 = vst.msk [vmem:[%s3723_s18 + $0x88] sm:$0xff] %vm496_vm0, %v423_v38  ;;  %595 = vrot.lane.b32.xlu1 %v423_v38, %s3341_s5  ;;  %563 = vrot.lane.b32.xlu0 %v343_v37, %s3341_s5  ;;  %v3871_v37 = vld [vmem:[#allocation6 + $0x2] ss:$0 sm:$0xff] }
 0x161   : > { %497 = vst.msk [vmem:[%s3723_s18] sm:$0xff] %vm496_vm0, %v338_v47  ;;  %513 = vst.msk [vmem:[%s3723_s18 + $0x80] sm:$0xff] %vm496_vm0, %v418_v48  ;;  %v2827_v49 = vpop.f32.mrb[2].mxu0  ;;  %v2851_v50 = vpop.f32.mrb[2].mxu1 }
 0x162   : > { %v353_v51 = vadd.f32 %v2827_v49, %v3717_v9  ;;  %v347_v52 = vpop.f32.mrb[3].mxu0  ;;  %v433_v53 = vadd.f32 %v2851_v50, %v3717_v9  ;;  %v427_v54 = vpop.f32.mrb[3].mxu1 }
 0x163   : > { %v348_v55 = vadd.f32 %v3717_v9, %v347_v52  ;;  %v428_v56 = vadd.f32 %v3717_v9, %v427_v54 }
 0x164   : > { %500 = vst.msk [vmem:[%s3723_s18 + $0x18] sm:$0xff] %vm496_vm0, %v353_v51  ;;  %516 = vst.msk [vmem:[%s3723_s18 + $0x98] sm:$0xff] %vm496_vm0, %v433_v53  ;;  %567 = vrot.lane.b32.xlu1 %v353_v51, %s3341_s5  ;;  %561 = vrot.lane.b32.xlu0 %v338_v47, %s3341_s5 }
 0x165   : > { %499 = vst.msk [vmem:[%s3723_s18 + $0x10] sm:$0xff] %vm496_vm0, %v348_v55  ;;  %515 = vst.msk [vmem:[%s3723_s18 + $0x90] sm:$0xff] %vm496_vm0, %v428_v56  ;;  %v2830_v57 = vpop.f32.mrb[4].mxu0  ;;  %v2854_v58 = vpop.f32.mrb[4].mxu1 }
 0x166   : > { %v363_v59 = vadd.f32 %v2830_v57, %v3717_v9  ;;  %v357_v60 = vpop.f32.mrb[5].mxu0  ;;  %v443_v61 = vadd.f32 %v2854_v58, %v3717_v9  ;;  %v437_v62 = vpop.f32.mrb[5].mxu1 }
 0x167   : > { %v358_v63 = vadd.f32 %v3717_v9, %v357_v60  ;;  %v438_v0 = vadd.f32 %v3717_v9, %v437_v62 }
 0x168   : > { %599 = vrot.lane.b32.xlu1 %v433_v53, %s3341_s5  ;;  %593 = vrot.lane.b32.xlu0 %v418_v48, %s3341_s5  ;;  %502 = vst.msk [vmem:[%s3723_s18 + $0x28] sm:$0xff] %vm496_vm0, %v363_v59  ;;  %518 = vst.msk [vmem:[%s3723_s18 + $0xa8] sm:$0xff] %vm496_vm0, %v443_v61 }
 0x169   : > { %501 = vst.msk [vmem:[%s3723_s18 + $0x20] sm:$0xff] %vm496_vm0, %v358_v63  ;;  %517 = vst.msk [vmem:[%s3723_s18 + $0xa0] sm:$0xff] %vm496_vm0, %v438_v0  ;;  %v2833_v1 = vpop.f32.mrb[6].mxu0  ;;  %v2857_v2 = vpop.f32.mrb[6].mxu1 }
 0x16a   : > { %v373_v3 = vadd.f32 %v2833_v1, %v3717_v9  ;;  %v367_v4 = vpop.f32.mrb[7].mxu0  ;;  %v453_v5 = vadd.f32 %v2857_v2, %v3717_v9  ;;  %v447_v6 = vpop.f32.mrb[7].mxu1 }
 0x16b   : > { %v368_v7 = vadd.f32 %v3717_v9, %v367_v4  ;;  %v448_v8 = vadd.f32 %v3717_v9, %v447_v6 }
 0x16c   : > { %565 = vrot.lane.b32.xlu1 %v348_v55, %s3341_s5  ;;  %597 = vrot.lane.b32.xlu0 %v428_v56, %s3341_s5  ;;  %504 = vst.msk [vmem:[%s3723_s18 + $0x38] sm:$0xff] %vm496_vm0, %v373_v3  ;;  %520 = vst.msk [vmem:[%s3723_s18 + $0xb8] sm:$0xff] %vm496_vm0, %v453_v5 }
 0x16d   : > { %503 = vst.msk [vmem:[%s3723_s18 + $0x30] sm:$0xff] %vm496_vm0, %v368_v7  ;;  %519 = vst.msk [vmem:[%s3723_s18 + $0xb0] sm:$0xff] %vm496_vm0, %v448_v8  ;;  %v2836_v11 = vpop.f32.mrb[8].mxu0  ;;  %v2860_v12 = vpop.f32.mrb[8].mxu1 }
 0x16e   : > { %v383_v13 = vadd.f32 %v2836_v11, %v3717_v9  ;;  %v377_v14 = vpop.f32.mrb[9].mxu0  ;;  %v3779_v15 = vadd.f32 %v2860_v12, %v3717_v9  ;;  %v457_v16 = vpop.f32.mrb[9].mxu1 }
 0x16f   : > { %v378_v17 = vadd.f32 %v3717_v9, %v377_v14  ;;  %v3783_v18 = vadd.f32 %v3717_v9, %v457_v16 }
 0x170   : > { %571 = vrot.lane.b32.xlu1 %v363_v59, %s3341_s5  ;;  %569 = vrot.lane.b32.xlu0 %v358_v63, %s3341_s5  ;;  %506 = vst.msk [vmem:[%s3723_s18 + $0x48] sm:$0xff] %vm496_vm0, %v383_v13  ;;  %522 = vst.msk [vmem:[%s3723_s18 + $0xc8] sm:$0xff] %vm496_vm0, %v3779_v15 }
 0x171   : > { %505 = vst.msk [vmem:[%s3723_s18 + $0x40] sm:$0xff] %vm496_vm0, %v378_v17  ;;  %521 = vst.msk [vmem:[%s3723_s18 + $0xc0] sm:$0xff] %vm496_vm0, %v3783_v18  ;;  %v2839_v19 = vpop.f32.mrb[10].mxu0  ;;  %v2863_v20 = vpop.f32.mrb[10].mxu1 }
 0x172   : > { %v3798_v21 = vadd.f32 %v2839_v19, %v3717_v9  ;;  %v387_v22 = vpop.f32.mrb[11].mxu0  ;;  %v3801_v23 = vadd.f32 %v2863_v20, %v3717_v9  ;;  %v467_v24 = vpop.f32.mrb[11].mxu1 }
 0x173   : > { %v3804_v25 = vadd.f32 %v3717_v9, %v387_v22  ;;  %v3807_v26 = vadd.f32 %v3717_v9, %v467_v24 }
 0x174   : > { %603 = vrot.lane.b32.xlu1 %v443_v61, %s3341_s5  ;;  %601 = vrot.lane.b32.xlu0 %v438_v0, %s3341_s5  ;;  %508 = vst.msk [vmem:[%s3723_s18 + $0x58] sm:$0xff] %vm496_vm0, %v3798_v21  ;;  %524 = vst.msk [vmem:[%s3723_s18 + $0xd8] sm:$0xff] %vm496_vm0, %v3801_v23 }
 0x175   : > { %507 = vst.msk [vmem:[%s3723_s18 + $0x50] sm:$0xff] %vm496_vm0, %v3804_v25  ;;  %523 = vst.msk [vmem:[%s3723_s18 + $0xd0] sm:$0xff] %vm496_vm0, %v3807_v26  ;;  %v2842_v27 = vpop.f32.mrb[12].mxu0  ;;  %v2866_v28 = vpop.f32.mrb[12].mxu1 }
 0x176   : > { %v3824_v29 = vadd.f32 %v2842_v27, %v3717_v9  ;;  %v397_v30 = vpop.f32.mrb[13].mxu0  ;;  %v3827_v31 = vadd.f32 %v2866_v28, %v3717_v9  ;;  %v477_v32 = vpop.f32.mrb[13].mxu1 }
 0x177   : > { %v3830_v33 = vadd.f32 %v3717_v9, %v397_v30  ;;  %v3833_v34 = vadd.f32 %v3717_v9, %v477_v32 }
 0x178   : > { %575 = vrot.lane.b32.xlu1 %v373_v3, %s3341_s5  ;;  %573 = vrot.lane.b32.xlu0 %v368_v7, %s3341_s5  ;;  %510 = vst.msk [vmem:[%s3723_s18 + $0x68] sm:$0xff] %vm496_vm0, %v3824_v29  ;;  %526 = vst.msk [vmem:[%s3723_s18 + $0xe8] sm:$0xff] %vm496_vm0, %v3827_v31 }
 0x179   : > { %509 = vst.msk [vmem:[%s3723_s18 + $0x60] sm:$0xff] %vm496_vm0, %v3830_v33  ;;  %525 = vst.msk [vmem:[%s3723_s18 + $0xe0] sm:$0xff] %vm496_vm0, %v3833_v34  ;;  %v2845_v35 = vpop.f32.mrb[14].mxu0  ;;  %v2869_v40 = vpop.f32.mrb[14].mxu1 }
 0x17a   : > { %v3850_v41 = vadd.f32 %v2845_v35, %v3717_v9  ;;  %v407_v42 = vpop.f32.mrb[15].mxu0  ;;  %v3853_v43 = vadd.f32 %v2869_v40, %v3717_v9  ;;  %v487_v44 = vpop.f32.mrb[15].mxu1 }
 0x17b   : > { %v3856_v45 = vadd.f32 %v3717_v9, %v407_v42  ;;  %v3859_v10 = vadd.f32 %v3717_v9, %v487_v44 }
 0x17c   : > { %607 = vrot.lane.b32.xlu1 %v453_v5, %s3341_s5  ;;  %605 = vrot.lane.b32.xlu0 %v448_v8, %s3341_s5  ;;  %512 = vst.msk [vmem:[%s3723_s18 + $0x78] sm:$0xff] %vm496_vm0, %v3850_v41  ;;  %528 = vst.msk [vmem:[%s3723_s18 + $0xf8] sm:$0xff] %vm496_vm0, %v3853_v43 }
 0x17d   : > { %511 = vst.msk [vmem:[%s3723_s18 + $0x70] sm:$0xff] %vm496_vm0, %v3856_v45  ;;  %527 = vst.msk [vmem:[%s3723_s18 + $0xf0] sm:$0xff] %vm496_vm0, %v3859_v10 }
 0x17e   : > { %v2904_v9 = vpop.f32.mrb[16].mxu1  ;;  %v2984_v38 = vpop.f32.mrb[16].mxu0 }
 0x17f   : > { %v3880_v39 = vadd.f32 %v2904_v9, %v3869_v36  ;;  %v781_v46 = vpop.f32.mrb[17].mxu1  ;;  %v3883_v47 = vadd.f32 %v2984_v38, %v3871_v37  ;;  %v1225_v48 = vpop.f32.mrb[17].mxu0 }
 0x180   : > { %579 = vrot.lane.b32.xlu1 %v383_v13, %s3341_s5  ;;  %577 = vrot.lane.b32.xlu0 %v378_v17, %s3341_s5  ;;  %v3888_v49 = vadd.f32 %v3869_v36, %v781_v46  ;;  %v3891_v50 = vadd.f32 %v3871_v37, %v1225_v48 }
 0x181   : > { %2512 = vst.msk [vmem:[%s3723_s18 + $0x208] sm:$0xff] %vm496_vm0, %v3880_v39  ;;  %2577 = vst.msk [vmem:[%s3723_s18 + $0x408] sm:$0xff] %vm496_vm0, %v3883_v47 }
 0x182   : > { %2511 = vst.msk [vmem:[%s3723_s18 + $0x200] sm:$0xff] %vm496_vm0, %v3888_v49  ;;  %2576 = vst.msk [vmem:[%s3723_s18 + $0x400] sm:$0xff] %vm496_vm0, %v3891_v50  ;;  %v2907_v51 = vpop.f32.mrb[18].mxu1  ;;  %v2987_v52 = vpop.f32.mrb[18].mxu0 }
 0x183   : > { %v3906_v53 = vadd.f32 %v2907_v51, %v3869_v36  ;;  %v791_v54 = vpop.f32.mrb[19].mxu1  ;;  %v3909_v55 = vadd.f32 %v2987_v52, %v3871_v37  ;;  %v1235_v56 = vpop.f32.mrb[19].mxu0 }
 0x184   : > { %611 = vrot.lane.b32.xlu1 %v3779_v15, %s3341_s5  ;;  %609 = vrot.lane.b32.xlu0 %v3783_v18, %s3341_s5  ;;  %v3916_v57 = vadd.f32 %v3869_v36, %v791_v54  ;;  %v3919_v58 = vadd.f32 %v3871_v37, %v1235_v56 }
 0x185   : > { %2514 = vst.msk [vmem:[%s3723_s18 + $0x218] sm:$0xff] %vm496_vm0, %v3906_v53  ;;  %2579 = vst.msk [vmem:[%s3723_s18 + $0x418] sm:$0xff] %vm496_vm0, %v3909_v55 }
 0x186   : > { %2513 = vst.msk [vmem:[%s3723_s18 + $0x210] sm:$0xff] %vm496_vm0, %v3916_v57  ;;  %2578 = vst.msk [vmem:[%s3723_s18 + $0x410] sm:$0xff] %vm496_vm0, %v3919_v58  ;;  %v2910_v59 = vpop.f32.mrb[20].mxu1  ;;  %v2990_v60 = vpop.f32.mrb[20].mxu0 }
 0x187   : > { %v3934_v61 = vadd.f32 %v2910_v59, %v3869_v36  ;;  %v801_v62 = vpop.f32.mrb[21].mxu1  ;;  %v3937_v63 = vadd.f32 %v2990_v60, %v3871_v37  ;;  %v1245_v0 = vpop.f32.mrb[21].mxu0 }
 0x188   : > { %583 = vrot.lane.b32.xlu1 %v3798_v21, %s3341_s5  ;;  %581 = vrot.lane.b32.xlu0 %v3804_v25, %s3341_s5  ;;  %v3944_v1 = vadd.f32 %v3869_v36, %v801_v62  ;;  %v3947_v2 = vadd.f32 %v3871_v37, %v1245_v0 }
 0x189   : > { %2516 = vst.msk [vmem:[%s3723_s18 + $0x228] sm:$0xff] %vm496_vm0, %v3934_v61  ;;  %2581 = vst.msk [vmem:[%s3723_s18 + $0x428] sm:$0xff] %vm496_vm0, %v3937_v63 }
 0x18a   : > { %2515 = vst.msk [vmem:[%s3723_s18 + $0x220] sm:$0xff] %vm496_vm0, %v3944_v1  ;;  %2580 = vst.msk [vmem:[%s3723_s18 + $0x420] sm:$0xff] %vm496_vm0, %v3947_v2  ;;  %v2913_v3 = vpop.f32.mrb[22].mxu1  ;;  %v2993_v4 = vpop.f32.mrb[22].mxu0 }
 0x18b   : > { %v3962_v5 = vadd.f32 %v2913_v3, %v3869_v36  ;;  %v811_v6 = vpop.f32.mrb[23].mxu1  ;;  %v3965_v7 = vadd.f32 %v2993_v4, %v3871_v37  ;;  %v1255_v8 = vpop.f32.mrb[23].mxu0 }
 0x18c   : > { %615 = vrot.lane.b32.xlu1 %v3801_v23, %s3341_s5  ;;  %613 = vrot.lane.b32.xlu0 %v3807_v26, %s3341_s5  ;;  %v3972_v11 = vadd.f32 %v3869_v36, %v811_v6  ;;  %v3975_v12 = vadd.f32 %v3871_v37, %v1255_v8 }
 0x18d   : > { %2518 = vst.msk [vmem:[%s3723_s18 + $0x238] sm:$0xff] %vm496_vm0, %v3962_v5  ;;  %2583 = vst.msk [vmem:[%s3723_s18 + $0x438] sm:$0xff] %vm496_vm0, %v3965_v7 }
 0x18e   : > { %2517 = vst.msk [vmem:[%s3723_s18 + $0x230] sm:$0xff] %vm496_vm0, %v3972_v11  ;;  %2582 = vst.msk [vmem:[%s3723_s18 + $0x430] sm:$0xff] %vm496_vm0, %v3975_v12  ;;  %v2916_v13 = vpop.f32.mrb[24].mxu1  ;;  %v2996_v14 = vpop.f32.mrb[24].mxu0 }
 0x18f   : > { %v3990_v15 = vadd.f32 %v2916_v13, %v3869_v36  ;;  %v821_v16 = vpop.f32.mrb[25].mxu1  ;;  %v3993_v17 = vadd.f32 %v2996_v14, %v3871_v37  ;;  %v1265_v18 = vpop.f32.mrb[25].mxu0 }
 0x190   : > { %587 = vrot.lane.b32.xlu1 %v3824_v29, %s3341_s5  ;;  %585 = vrot.lane.b32.xlu0 %v3830_v33, %s3341_s5  ;;  %v4000_v19 = vadd.f32 %v3869_v36, %v821_v16  ;;  %v4003_v20 = vadd.f32 %v3871_v37, %v1265_v18 }
 0x191   : > { %2520 = vst.msk [vmem:[%s3723_s18 + $0x248] sm:$0xff] %vm496_vm0, %v3990_v15  ;;  %2585 = vst.msk [vmem:[%s3723_s18 + $0x448] sm:$0xff] %vm496_vm0, %v3993_v17 }
 0x192   : > { %2519 = vst.msk [vmem:[%s3723_s18 + $0x240] sm:$0xff] %vm496_vm0, %v4000_v19  ;;  %2584 = vst.msk [vmem:[%s3723_s18 + $0x440] sm:$0xff] %vm496_vm0, %v4003_v20  ;;  %v2919_v21 = vpop.f32.mrb[26].mxu1  ;;  %v2999_v22 = vpop.f32.mrb[26].mxu0 }
 0x193   : > { %v4018_v23 = vadd.f32 %v2919_v21, %v3869_v36  ;;  %v831_v24 = vpop.f32.mrb[27].mxu1  ;;  %v4021_v25 = vadd.f32 %v2999_v22, %v3871_v37  ;;  %v1275_v26 = vpop.f32.mrb[27].mxu0 }
 0x194   : > { %619 = vrot.lane.b32.xlu1 %v3827_v31, %s3341_s5  ;;  %617 = vrot.lane.b32.xlu0 %v3833_v34, %s3341_s5  ;;  %v4028_v27 = vadd.f32 %v3869_v36, %v831_v24  ;;  %v4031_v28 = vadd.f32 %v3871_v37, %v1275_v26 }
 0x195   : > { %2522 = vst.msk [vmem:[%s3723_s18 + $0x258] sm:$0xff] %vm496_vm0, %v4018_v23  ;;  %2587 = vst.msk [vmem:[%s3723_s18 + $0x458] sm:$0xff] %vm496_vm0, %v4021_v25 }
 0x196   : > { %2521 = vst.msk [vmem:[%s3723_s18 + $0x250] sm:$0xff] %vm496_vm0, %v4028_v27  ;;  %2586 = vst.msk [vmem:[%s3723_s18 + $0x450] sm:$0xff] %vm496_vm0, %v4031_v28  ;;  %v2922_v29 = vpop.f32.mrb[28].mxu1  ;;  %v3002_v30 = vpop.f32.mrb[28].mxu0 }
 0x197   : > { %v4046_v31 = vadd.f32 %v2922_v29, %v3869_v36  ;;  %v841_v32 = vpop.f32.mrb[29].mxu1  ;;  %v4049_v33 = vadd.f32 %v3002_v30, %v3871_v37  ;;  %v1285_v34 = vpop.f32.mrb[29].mxu0 }
 0x198   : > { %591 = vrot.lane.b32.xlu1 %v3850_v41, %s3341_s5  ;;  %589 = vrot.lane.b32.xlu0 %v3856_v45, %s3341_s5  ;;  %v4056_v35 = vadd.f32 %v3869_v36, %v841_v32  ;;  %v4059_v40 = vadd.f32 %v3871_v37, %v1285_v34 }
 0x199   : > { %2524 = vst.msk [vmem:[%s3723_s18 + $0x268] sm:$0xff] %vm496_vm0, %v4046_v31  ;;  %2589 = vst.msk [vmem:[%s3723_s18 + $0x468] sm:$0xff] %vm496_vm0, %v4049_v33 }
 0x19a   : > { %2523 = vst.msk [vmem:[%s3723_s18 + $0x260] sm:$0xff] %vm496_vm0, %v4056_v35  ;;  %2588 = vst.msk [vmem:[%s3723_s18 + $0x460] sm:$0xff] %vm496_vm0, %v4059_v40  ;;  %v2925_v41 = vpop.f32.mrb[30].mxu1  ;;  %v3005_v42 = vpop.f32.mrb[30].mxu0 }
 0x19b   : > { %v4074_v44 = vadd.f32 %v2925_v41, %v3869_v36  ;;  %v851_v45 = vpop.f32.mrb[31].mxu1  ;;  %v4077_v9 = vadd.f32 %v3005_v42, %v3871_v37  ;;  %v1295_v38 = vpop.f32.mrb[31].mxu0 }
 0x19c   : > { %623 = vrot.lane.b32.xlu1 %v3853_v43, %s3341_s5  ;;  %621 = vrot.lane.b32.xlu0 %v3859_v10, %s3341_s5  ;;  %v4084_v46 = vadd.f32 %v3869_v36, %v851_v45  ;;  %v4087_v48 = vadd.f32 %v3871_v37, %v1295_v38 }
 0x19d   : > { %2526 = vst.msk [vmem:[%s3723_s18 + $0x278] sm:$0xff] %vm496_vm0, %v4074_v44  ;;  %2591 = vst.msk [vmem:[%s3723_s18 + $0x478] sm:$0xff] %vm496_vm0, %v4077_v9 }
 0x19e   : > { %2525 = vst.msk [vmem:[%s3723_s18 + $0x270] sm:$0xff] %vm496_vm0, %v4084_v46  ;;  %2590 = vst.msk [vmem:[%s3723_s18 + $0x470] sm:$0xff] %vm496_vm0, %v4087_v48  ;;  %v2928_v43 = vpop.f32.mrb[32].mxu1  ;;  %v3008_v10 = vpop.f32.mrb[32].mxu0 }
 0x19f   : > { %v4102_v51 = vadd.f32 %v2928_v43, %v3869_v36  ;;  %v861_v52 = vpop.f32.mrb[33].mxu1  ;;  %v4105_v54 = vadd.f32 %v3008_v10, %v3871_v37  ;;  %v1305_v56 = vpop.f32.mrb[33].mxu0 }
 0x1a0   : > { %1007 = vrot.lane.b32.xlu1 %v3880_v39, %s3341_s5  ;;  %1005 = vrot.lane.b32.xlu0 %v3888_v49, %s3341_s5  ;;  %v4112_v59 = vadd.f32 %v3869_v36, %v861_v52  ;;  %v4115_v60 = vadd.f32 %v3871_v37, %v1305_v56 }
 0x1a1   : > { %2528 = vst.msk [vmem:[%s3723_s18 + $0x288] sm:$0xff] %vm496_vm0, %v4102_v51  ;;  %2593 = vst.msk [vmem:[%s3723_s18 + $0x488] sm:$0xff] %vm496_vm0, %v4105_v54 }
 0x1a2   : > { %2527 = vst.msk [vmem:[%s3723_s18 + $0x280] sm:$0xff] %vm496_vm0, %v4112_v59  ;;  %2592 = vst.msk [vmem:[%s3723_s18 + $0x480] sm:$0xff] %vm496_vm0, %v4115_v60  ;;  %v2931_v39 = vpop.f32.mrb[34].mxu1  ;;  %v3011_v49 = vpop.f32.mrb[34].mxu0 }
 0x1a3   : > { %v4130_v62 = vadd.f32 %v2931_v39, %v3869_v36  ;;  %v871_v0 = vpop.f32.mrb[35].mxu1  ;;  %v4133_v3 = vadd.f32 %v3011_v49, %v3871_v37  ;;  %v1315_v4 = vpop.f32.mrb[35].mxu0 }
 0x1a4   : > { %1451 = vrot.lane.b32.xlu1 %v3883_v47, %s3341_s5  ;;  %1449 = vrot.lane.b32.xlu0 %v3891_v50, %s3341_s5  ;;  %v4140_v6 = vadd.f32 %v3869_v36, %v871_v0  ;;  %v4143_v8 = vadd.f32 %v3871_v37, %v1315_v4 }
 0x1a5   : > { %2530 = vst.msk [vmem:[%s3723_s18 + $0x298] sm:$0xff] %vm496_vm0, %v4130_v62  ;;  %2595 = vst.msk [vmem:[%s3723_s18 + $0x498] sm:$0xff] %vm496_vm0, %v4133_v3 }
 0x1a6   : > { %2529 = vst.msk [vmem:[%s3723_s18 + $0x290] sm:$0xff] %vm496_vm0, %v4140_v6  ;;  %2594 = vst.msk [vmem:[%s3723_s18 + $0x490] sm:$0xff] %vm496_vm0, %v4143_v8  ;;  %v2934_v47 = vpop.f32.mrb[36].mxu1  ;;  %v3014_v50 = vpop.f32.mrb[36].mxu0 }
 0x1a7   : > { %v4158_v13 = vadd.f32 %v2934_v47, %v3869_v36  ;;  %v881_v14 = vpop.f32.mrb[37].mxu1  ;;  %v4161_v16 = vadd.f32 %v3014_v50, %v3871_v37  ;;  %v1325_v18 = vpop.f32.mrb[37].mxu0 }
 0x1a8   : > { %1011 = vrot.lane.b32.xlu1 %v3906_v53, %s3341_s5  ;;  %1009 = vrot.lane.b32.xlu0 %v3916_v57, %s3341_s5  ;;  %v4168_v21 = vadd.f32 %v3869_v36, %v881_v14  ;;  %v4171_v22 = vadd.f32 %v3871_v37, %v1325_v18 }
 0x1a9   : > { %2532 = vst.msk [vmem:[%s3723_s18 + $0x2a8] sm:$0xff] %vm496_vm0, %v4158_v13  ;;  %2597 = vst.msk [vmem:[%s3723_s18 + $0x4a8] sm:$0xff] %vm496_vm0, %v4161_v16 }
 0x1aa   : > { %2531 = vst.msk [vmem:[%s3723_s18 + $0x2a0] sm:$0xff] %vm496_vm0, %v4168_v21  ;;  %2596 = vst.msk [vmem:[%s3723_s18 + $0x4a0] sm:$0xff] %vm496_vm0, %v4171_v22  ;;  %v2937_v53 = vpop.f32.mrb[38].mxu1  ;;  %v3017_v57 = vpop.f32.mrb[38].mxu0 }
 0x1ab   : > { %v4186_v24 = vadd.f32 %v2937_v53, %v3869_v36  ;;  %v891_v26 = vpop.f32.mrb[39].mxu1  ;;  %v4189_v29 = vadd.f32 %v3017_v57, %v3871_v37  ;;  %v1335_v30 = vpop.f32.mrb[39].mxu0 }
 0x1ac   : > { %1455 = vrot.lane.b32.xlu1 %v3909_v55, %s3341_s5  ;;  %1453 = vrot.lane.b32.xlu0 %v3919_v58, %s3341_s5  ;;  %v4196_v32 = vadd.f32 %v3869_v36, %v891_v26  ;;  %v4199_v34 = vadd.f32 %v3871_v37, %v1335_v30 }
 0x1ad   : > { %2534 = vst.msk [vmem:[%s3723_s18 + $0x2b8] sm:$0xff] %vm496_vm0, %v4186_v24  ;;  %2599 = vst.msk [vmem:[%s3723_s18 + $0x4b8] sm:$0xff] %vm496_vm0, %v4189_v29 }
 0x1ae   : > { %2533 = vst.msk [vmem:[%s3723_s18 + $0x2b0] sm:$0xff] %vm496_vm0, %v4196_v32  ;;  %2598 = vst.msk [vmem:[%s3723_s18 + $0x4b0] sm:$0xff] %vm496_vm0, %v4199_v34  ;;  %v2940_v55 = vpop.f32.mrb[40].mxu1  ;;  %v3020_v58 = vpop.f32.mrb[40].mxu0 }
 0x1af   : > { %v4214_v41 = vadd.f32 %v2940_v55, %v3869_v36  ;;  %v901_v42 = vpop.f32.mrb[41].mxu1  ;;  %v4217_v45 = vadd.f32 %v3020_v58, %v3871_v37  ;;  %v1345_v38 = vpop.f32.mrb[41].mxu0 }
 0x1b0   : > { %1015 = vrot.lane.b32.xlu1 %v3934_v61, %s3341_s5  ;;  %1013 = vrot.lane.b32.xlu0 %v3944_v1, %s3341_s5  ;;  %v4224_v43 = vadd.f32 %v3869_v36, %v901_v42  ;;  %v4227_v10 = vadd.f32 %v3871_v37, %v1345_v38 }
 0x1b1   : > { %2536 = vst.msk [vmem:[%s3723_s18 + $0x2c8] sm:$0xff] %vm496_vm0, %v4214_v41  ;;  %2601 = vst.msk [vmem:[%s3723_s18 + $0x4c8] sm:$0xff] %vm496_vm0, %v4217_v45 }
 0x1b2   : > { %2535 = vst.msk [vmem:[%s3723_s18 + $0x2c0] sm:$0xff] %vm496_vm0, %v4224_v43  ;;  %2600 = vst.msk [vmem:[%s3723_s18 + $0x4c0] sm:$0xff] %vm496_vm0, %v4227_v10  ;;  %v2943_v61 = vpop.f32.mrb[42].mxu1  ;;  %v3023_v1 = vpop.f32.mrb[42].mxu0 }
 0x1b3   : > { %v4242_v52 = vadd.f32 %v2943_v61, %v3869_v36  ;;  %v911_v56 = vpop.f32.mrb[43].mxu1  ;;  %v4245_v39 = vadd.f32 %v3023_v1, %v3871_v37  ;;  %v1355_v49 = vpop.f32.mrb[43].mxu0 }
 0x1b4   : > { %1459 = vrot.lane.b32.xlu1 %v3937_v63, %s3341_s5  ;;  %1457 = vrot.lane.b32.xlu0 %v3947_v2, %s3341_s5  ;;  %v4252_v0 = vadd.f32 %v3869_v36, %v911_v56  ;;  %v4255_v4 = vadd.f32 %v3871_v37, %v1355_v49 }
 0x1b5   : > { %2538 = vst.msk [vmem:[%s3723_s18 + $0x2d8] sm:$0xff] %vm496_vm0, %v4242_v52  ;;  %2603 = vst.msk [vmem:[%s3723_s18 + $0x4d8] sm:$0xff] %vm496_vm0, %v4245_v39 }
 0x1b6   : > { %2537 = vst.msk [vmem:[%s3723_s18 + $0x2d0] sm:$0xff] %vm496_vm0, %v4252_v0  ;;  %2602 = vst.msk [vmem:[%s3723_s18 + $0x4d0] sm:$0xff] %vm496_vm0, %v4255_v4  ;;  %v2946_v63 = vpop.f32.mrb[44].mxu1  ;;  %v3026_v2 = vpop.f32.mrb[44].mxu0 }
 0x1b7   : > { %v4270_v47 = vadd.f32 %v2946_v63, %v3869_v36  ;;  %v921_v50 = vpop.f32.mrb[45].mxu1  ;;  %v4273_v14 = vadd.f32 %v3026_v2, %v3871_v37  ;;  %v1365_v18 = vpop.f32.mrb[45].mxu0 }
 0x1b8   : > { %1019 = vrot.lane.b32.xlu1 %v3962_v5, %s3341_s5  ;;  %1017 = vrot.lane.b32.xlu0 %v3972_v11, %s3341_s5  ;;  %v4280_v53 = vadd.f32 %v3869_v36, %v921_v50  ;;  %v4283_v57 = vadd.f32 %v3871_v37, %v1365_v18 }
 0x1b9   : > { %2540 = vst.msk [vmem:[%s3723_s18 + $0x2e8] sm:$0xff] %vm496_vm0, %v4270_v47  ;;  %2605 = vst.msk [vmem:[%s3723_s18 + $0x4e8] sm:$0xff] %vm496_vm0, %v4273_v14 }
 0x1ba   : > { %2539 = vst.msk [vmem:[%s3723_s18 + $0x2e0] sm:$0xff] %vm496_vm0, %v4280_v53  ;;  %2604 = vst.msk [vmem:[%s3723_s18 + $0x4e0] sm:$0xff] %vm496_vm0, %v4283_v57  ;;  %v2949_v5 = vpop.f32.mrb[46].mxu1  ;;  %v3029_v11 = vpop.f32.mrb[46].mxu0 }
 0x1bb   : > { %v4298_v26 = vadd.f32 %v2949_v5, %v3869_v36  ;;  %v931_v30 = vpop.f32.mrb[47].mxu1  ;;  %v4301_v55 = vadd.f32 %v3029_v11, %v3871_v37  ;;  %v1375_v58 = vpop.f32.mrb[47].mxu0 }
 0x1bc   : > { %1463 = vrot.lane.b32.xlu1 %v3965_v7, %s3341_s5  ;;  %1461 = vrot.lane.b32.xlu0 %v3975_v12, %s3341_s5  ;;  %v4308_v42 = vadd.f32 %v3869_v36, %v931_v30  ;;  %v4311_v38 = vadd.f32 %v3871_v37, %v1375_v58 }
 0x1bd   : > { %2542 = vst.msk [vmem:[%s3723_s18 + $0x2f8] sm:$0xff] %vm496_vm0, %v4298_v26  ;;  %2607 = vst.msk [vmem:[%s3723_s18 + $0x4f8] sm:$0xff] %vm496_vm0, %v4301_v55 }
 0x1be   : > { %2541 = vst.msk [vmem:[%s3723_s18 + $0x2f0] sm:$0xff] %vm496_vm0, %v4308_v42  ;;  %2606 = vst.msk [vmem:[%s3723_s18 + $0x4f0] sm:$0xff] %vm496_vm0, %v4311_v38 }
 0x1c0   : > { %1023 = vrot.lane.b32.xlu1 %v3990_v15, %s3341_s5  ;;  %1021 = vrot.lane.b32.xlu0 %v4000_v19, %s3341_s5 }
 0x1c4   : > { %1467 = vrot.lane.b32.xlu1 %v3993_v17, %s3341_s5  ;;  %1465 = vrot.lane.b32.xlu0 %v4003_v20, %s3341_s5 }
 0x1c8   : > { %1027 = vrot.lane.b32.xlu1 %v4018_v23, %s3341_s5  ;;  %1025 = vrot.lane.b32.xlu0 %v4028_v27, %s3341_s5 }
 0x1cc   : > { %1471 = vrot.lane.b32.xlu1 %v4021_v25, %s3341_s5  ;;  %1469 = vrot.lane.b32.xlu0 %v4031_v28, %s3341_s5 }
 0x1d0   : > { %1031 = vrot.lane.b32.xlu1 %v4046_v31, %s3341_s5  ;;  %1029 = vrot.lane.b32.xlu0 %v4056_v35, %s3341_s5 }
 0x1d2   : > { %v596_v36 = vpop.permute.xlu1 %595  ;;  %v564_v37 = vpop.permute.xlu0 %563 }
 0x1d3   : > { %2495 = vst.msk [vmem:[%s3723_s18 + $0x188] sm:$0xff] %vm496_vm0, %v596_v36  ;;  %2479 = vst.msk [vmem:[%s3723_s18 + $0x108] sm:$0xff] %vm496_vm0, %v564_v37 }
 0x1d4   : > { %1475 = vrot.lane.b32.xlu1 %v4049_v33, %s3341_s5  ;;  %1473 = vrot.lane.b32.xlu0 %v4059_v40, %s3341_s5 }
 0x1d6   : > { %v568_v7 = vpop.permute.xlu1 %567  ;;  %v562_v12 = vpop.permute.xlu0 %561 }
 0x1d7   : > { %2481 = vst.msk [vmem:[%s3723_s18 + $0x118] sm:$0xff] %vm496_vm0, %v568_v7  ;;  %2478 = vst.msk [vmem:[%s3723_s18 + $0x100] sm:$0xff] %vm496_vm0, %v562_v12 }
 0x1d8   : > { %1035 = vrot.lane.b32.xlu1 %v4074_v44, %s3341_s5  ;;  %1033 = vrot.lane.b32.xlu0 %v4084_v46, %s3341_s5 }
 0x1da   : > { %v600_v15 = vpop.permute.xlu1 %599  ;;  %v594_v17 = vpop.permute.xlu0 %593 }
 0x1db   : > { %2497 = vst.msk [vmem:[%s3723_s18 + $0x198] sm:$0xff] %vm496_vm0, %v600_v15  ;;  %2494 = vst.msk [vmem:[%s3723_s18 + $0x180] sm:$0xff] %vm496_vm0, %v594_v17 }
 0x1dc   : > { %1479 = vrot.lane.b32.xlu1 %v4077_v9, %s3341_s5  ;;  %1477 = vrot.lane.b32.xlu0 %v4087_v48, %s3341_s5 }
 0x1de   : > { %v566_v19 = vpop.permute.xlu1 %565  ;;  %v598_v20 = vpop.permute.xlu0 %597 }
 0x1df   : > { %2480 = vst.msk [vmem:[%s3723_s18 + $0x110] sm:$0xff] %vm496_vm0, %v566_v19  ;;  %2496 = vst.msk [vmem:[%s3723_s18 + $0x190] sm:$0xff] %vm496_vm0, %v598_v20 }
 0x1e0   : > { %1039 = vrot.lane.b32.xlu1 %v4102_v51, %s3341_s5  ;;  %1037 = vrot.lane.b32.xlu0 %v4112_v59, %s3341_s5 }
 0x1e2   : > { %v572_v23 = vpop.permute.xlu1 %571  ;;  %v570_v25 = vpop.permute.xlu0 %569 }
 0x1e3   : > { %2483 = vst.msk [vmem:[%s3723_s18 + $0x128] sm:$0xff] %vm496_vm0, %v572_v23  ;;  %2482 = vst.msk [vmem:[%s3723_s18 + $0x120] sm:$0xff] %vm496_vm0, %v570_v25 }
 0x1e4   : > { %1483 = vrot.lane.b32.xlu1 %v4105_v54, %s3341_s5  ;;  %1481 = vrot.lane.b32.xlu0 %v4115_v60, %s3341_s5 }
 0x1e6   : > { %v604_v27 = vpop.permute.xlu1 %603  ;;  %v602_v28 = vpop.permute.xlu0 %601 }
 0x1e7   : > { %2499 = vst.msk [vmem:[%s3723_s18 + $0x1a8] sm:$0xff] %vm496_vm0, %v604_v27  ;;  %2498 = vst.msk [vmem:[%s3723_s18 + $0x1a0] sm:$0xff] %vm496_vm0, %v602_v28 }
 0x1e8   : > { %1043 = vrot.lane.b32.xlu1 %v4130_v62, %s3341_s5  ;;  %1041 = vrot.lane.b32.xlu0 %v4140_v6, %s3341_s5 }
 0x1ea   : > { %v576_v31 = vpop.permute.xlu1 %575  ;;  %v574_v33 = vpop.permute.xlu0 %573 }
 0x1eb   : > { %2485 = vst.msk [vmem:[%s3723_s18 + $0x138] sm:$0xff] %vm496_vm0, %v576_v31  ;;  %2484 = vst.msk [vmem:[%s3723_s18 + $0x130] sm:$0xff] %vm496_vm0, %v574_v33 }
 0x1ec   : > { %1487 = vrot.lane.b32.xlu1 %v4133_v3, %s3341_s5  ;;  %1485 = vrot.lane.b32.xlu0 %v4143_v8, %s3341_s5 }
 0x1ee   : > { %v608_v35 = vpop.permute.xlu1 %607  ;;  %v606_v40 = vpop.permute.xlu0 %605 }
 0x1ef   : > { %2501 = vst.msk [vmem:[%s3723_s18 + $0x1b8] sm:$0xff] %vm496_vm0, %v608_v35  ;;  %2500 = vst.msk [vmem:[%s3723_s18 + $0x1b0] sm:$0xff] %vm496_vm0, %v606_v40 }
 0x1f0   : > { %1047 = vrot.lane.b32.xlu1 %v4158_v13, %s3341_s5  ;;  %1045 = vrot.lane.b32.xlu0 %v4168_v21, %s3341_s5 }
 0x1f2   : > { %v580_v44 = vpop.permute.xlu1 %579  ;;  %v578_v9 = vpop.permute.xlu0 %577 }
 0x1f3   : > { %2487 = vst.msk [vmem:[%s3723_s18 + $0x148] sm:$0xff] %vm496_vm0, %v580_v44  ;;  %2486 = vst.msk [vmem:[%s3723_s18 + $0x140] sm:$0xff] %vm496_vm0, %v578_v9 }
 0x1f4   : > { %1491 = vrot.lane.b32.xlu1 %v4161_v16, %s3341_s5  ;;  %1489 = vrot.lane.b32.xlu0 %v4171_v22, %s3341_s5 }
 0x1f6   : > { %v612_v46 = vpop.permute.xlu1 %611  ;;  %v610_v48 = vpop.permute.xlu0 %609 }
 0x1f7   : > { %2503 = vst.msk [vmem:[%s3723_s18 + $0x1c8] sm:$0xff] %vm496_vm0, %v612_v46  ;;  %2502 = vst.msk [vmem:[%s3723_s18 + $0x1c0] sm:$0xff] %vm496_vm0, %v610_v48 }
 0x1f8   : > { %1051 = vrot.lane.b32.xlu1 %v4186_v24, %s3341_s5  ;;  %1049 = vrot.lane.b32.xlu0 %v4196_v32, %s3341_s5 }
 0x1fa   : > { %v584_v51 = vpop.permute.xlu1 %583  ;;  %v582_v54 = vpop.permute.xlu0 %581 }
 0x1fb   : > { %2489 = vst.msk [vmem:[%s3723_s18 + $0x158] sm:$0xff] %vm496_vm0, %v584_v51  ;;  %2488 = vst.msk [vmem:[%s3723_s18 + $0x150] sm:$0xff] %vm496_vm0, %v582_v54 }
 0x1fc   : > { %1495 = vrot.lane.b32.xlu1 %v4189_v29, %s3341_s5  ;;  %1493 = vrot.lane.b32.xlu0 %v4199_v34, %s3341_s5 }
 0x1fe   : > { %v616_v59 = vpop.permute.xlu1 %615  ;;  %v614_v60 = vpop.permute.xlu0 %613 }
 0x1ff   : > { %2505 = vst.msk [vmem:[%s3723_s18 + $0x1d8] sm:$0xff] %vm496_vm0, %v616_v59  ;;  %2504 = vst.msk [vmem:[%s3723_s18 + $0x1d0] sm:$0xff] %vm496_vm0, %v614_v60 }
 0x200   : > { %1055 = vrot.lane.b32.xlu1 %v4214_v41, %s3341_s5  ;;  %1053 = vrot.lane.b32.xlu0 %v4224_v43, %s3341_s5 }
 0x202   : > { %v588_v62 = vpop.permute.xlu1 %587  ;;  %v586_v3 = vpop.permute.xlu0 %585 }
 0x203   : > { %2491 = vst.msk [vmem:[%s3723_s18 + $0x168] sm:$0xff] %vm496_vm0, %v588_v62  ;;  %2490 = vst.msk [vmem:[%s3723_s18 + $0x160] sm:$0xff] %vm496_vm0, %v586_v3 }
 0x204   : > { %1499 = vrot.lane.b32.xlu1 %v4217_v45, %s3341_s5  ;;  %1497 = vrot.lane.b32.xlu0 %v4227_v10, %s3341_s5 }
 0x206   : > { %v620_v6 = vpop.permute.xlu1 %619  ;;  %v618_v8 = vpop.permute.xlu0 %617 }
 0x207   : > { %2507 = vst.msk [vmem:[%s3723_s18 + $0x1e8] sm:$0xff] %vm496_vm0, %v620_v6  ;;  %2506 = vst.msk [vmem:[%s3723_s18 + $0x1e0] sm:$0xff] %vm496_vm0, %v618_v8 }
 0x208   : > { %1059 = vrot.lane.b32.xlu1 %v4242_v52, %s3341_s5  ;;  %1057 = vrot.lane.b32.xlu0 %v4252_v0, %s3341_s5 }
 0x20a   : > { %v592_v13 = vpop.permute.xlu1 %591  ;;  %v590_v16 = vpop.permute.xlu0 %589 }
 0x20b   : > { %2493 = vst.msk [vmem:[%s3723_s18 + $0x178] sm:$0xff] %vm496_vm0, %v592_v13  ;;  %2492 = vst.msk [vmem:[%s3723_s18 + $0x170] sm:$0xff] %vm496_vm0, %v590_v16 }
 0x20c   : > { %1503 = vrot.lane.b32.xlu1 %v4245_v39, %s3341_s5  ;;  %1501 = vrot.lane.b32.xlu0 %v4255_v4, %s3341_s5 }
 0x20e   : > { %v624_v21 = vpop.permute.xlu1 %623  ;;  %v622_v22 = vpop.permute.xlu0 %621 }
 0x20f   : > { %2509 = vst.msk [vmem:[%s3723_s18 + $0x1f8] sm:$0xff] %vm496_vm0, %v624_v21  ;;  %2508 = vst.msk [vmem:[%s3723_s18 + $0x1f0] sm:$0xff] %vm496_vm0, %v622_v22 }
 0x210   : > { %1063 = vrot.lane.b32.xlu1 %v4270_v47, %s3341_s5  ;;  %1061 = vrot.lane.b32.xlu0 %v4280_v53, %s3341_s5 }
 0x212   : > { %v1008_v24 = vpop.permute.xlu1 %1007  ;;  %v1006_v29 = vpop.permute.xlu0 %1005 }
 0x213   : > { %2544 = vst.msk [vmem:[%s3723_s18 + $0x308] sm:$0xff] %vm496_vm0, %v1008_v24  ;;  %2543 = vst.msk [vmem:[%s3723_s18 + $0x300] sm:$0xff] %vm496_vm0, %v1006_v29  ;;  %v1997_v24 = vld [vmem:[%s3723_s18] sm:$0xff] (%p3474_p11)  ;;  %v1999_v29 = vld [vmem:[%s3723_s18 + $0x8] sm:$0xff] (%p3474_p11) }
 0x214   : > { %1507 = vrot.lane.b32.xlu1 %v4273_v14, %s3341_s5  ;;  %1505 = vrot.lane.b32.xlu0 %v4283_v57, %s3341_s5  ;;  %1998 = vst [vmem:[%s4622_s20] sm:$0xff] (%p3474_p11), %v1997_v24  ;;  %2000 = vst [vmem:[%s4622_s20 + $0x8] sm:$0xff] (%p3474_p11), %v1999_v29 }
 0x215   : > { %v2125_v24 = vld [vmem:[%s3723_s18 + $0x200] sm:$0xff] (%p3474_p11)  ;;  %v2127_v29 = vld [vmem:[%s3723_s18 + $0x208] sm:$0xff] (%p3474_p11) }
 0x216   : > { %v1452_v32 = vpop.permute.xlu1 %1451  ;;  %v1450_v34 = vpop.permute.xlu0 %1449  ;;  %2126 = vst [vmem:[%s4622_s20 + $0x400] sm:$0xff] (%p3474_p11), %v2125_v24  ;;  %2128 = vst [vmem:[%s4622_s20 + $0x408] sm:$0xff] (%p3474_p11), %v2127_v29  ;;  %v2253_v24 = vld [vmem:[%s3723_s18 + $0x400] sm:$0xff] (%p3474_p11)  ;;  %v2255_v29 = vld [vmem:[%s3723_s18 + $0x408] sm:$0xff] (%p3474_p11) }
 0x217   : > { %2609 = vst.msk [vmem:[%s3723_s18 + $0x508] sm:$0xff] %vm496_vm0, %v1452_v32  ;;  %2608 = vst.msk [vmem:[%s3723_s18 + $0x500] sm:$0xff] %vm496_vm0, %v1450_v34  ;;  %v2001_v32 = vld [vmem:[%s3723_s18 + $0x10] sm:$0xff] (%p3474_p11)  ;;  %v2003_v34 = vld [vmem:[%s3723_s18 + $0x18] sm:$0xff] (%p3474_p11) }
 0x218   : > { %1067 = vrot.lane.b32.xlu1 %v4298_v26, %s3341_s5  ;;  %1065 = vrot.lane.b32.xlu0 %v4308_v42, %s3341_s5  ;;  %2002 = vst [vmem:[%s4622_s20 + $0x10] sm:$0xff] (%p3474_p11), %v2001_v32  ;;  %2004 = vst [vmem:[%s4622_s20 + $0x18] sm:$0xff] (%p3474_p11), %v2003_v34 }
 0x219   : > { %v2129_v32 = vld [vmem:[%s3723_s18 + $0x210] sm:$0xff] (%p3474_p11)  ;;  %v2131_v34 = vld [vmem:[%s3723_s18 + $0x218] sm:$0xff] (%p3474_p11)  ;;  %2254 = vst [vmem:[%s4622_s20 + $0x800] sm:$0xff] (%p3474_p11), %v2253_v24  ;;  %2256 = vst [vmem:[%s4622_s20 + $0x808] sm:$0xff] (%p3474_p11), %v2255_v29 }
 0x21a   : > { %v1012_v41 = vpop.permute.xlu1 %1011  ;;  %v1010_v45 = vpop.permute.xlu0 %1009  ;;  %2130 = vst [vmem:[%s4622_s20 + $0x410] sm:$0xff] (%p3474_p11), %v2129_v32  ;;  %2132 = vst [vmem:[%s4622_s20 + $0x418] sm:$0xff] (%p3474_p11), %v2131_v34  ;;  %v2257_v32 = vld [vmem:[%s3723_s18 + $0x410] sm:$0xff] (%p3474_p11)  ;;  %v2259_v34 = vld [vmem:[%s3723_s18 + $0x418] sm:$0xff] (%p3474_p11) }
 0x21b   : > { %2546 = vst.msk [vmem:[%s3723_s18 + $0x318] sm:$0xff] %vm496_vm0, %v1012_v41  ;;  %2545 = vst.msk [vmem:[%s3723_s18 + $0x310] sm:$0xff] %vm496_vm0, %v1010_v45  ;;  %v2005_v41 = vld [vmem:[%s3723_s18 + $0x20] sm:$0xff] (%p3474_p11)  ;;  %v2007_v45 = vld [vmem:[%s3723_s18 + $0x28] sm:$0xff] (%p3474_p11) }
 0x21c   : > { %1511 = vrot.lane.b32.xlu1 %v4301_v55, %s3341_s5  ;;  %1509 = vrot.lane.b32.xlu0 %v4311_v38, %s3341_s5  ;;  %2006 = vst [vmem:[%s4622_s20 + $0x20] sm:$0xff] (%p3474_p11), %v2005_v41  ;;  %2008 = vst [vmem:[%s4622_s20 + $0x28] sm:$0xff] (%p3474_p11), %v2007_v45 }
 0x21d   : > { %v2133_v41 = vld [vmem:[%s3723_s18 + $0x220] sm:$0xff] (%p3474_p11)  ;;  %v2135_v45 = vld [vmem:[%s3723_s18 + $0x228] sm:$0xff] (%p3474_p11)  ;;  %2258 = vst [vmem:[%s4622_s20 + $0x810] sm:$0xff] (%p3474_p11), %v2257_v32  ;;  %2260 = vst [vmem:[%s4622_s20 + $0x818] sm:$0xff] (%p3474_p11), %v2259_v34 }
 0x21e   : > { %v1456_v43 = vpop.permute.xlu1 %1455  ;;  %v1454_v10 = vpop.permute.xlu0 %1453  ;;  %2134 = vst [vmem:[%s4622_s20 + $0x420] sm:$0xff] (%p3474_p11), %v2133_v41  ;;  %2136 = vst [vmem:[%s4622_s20 + $0x428] sm:$0xff] (%p3474_p11), %v2135_v45  ;;  %v2261_v41 = vld [vmem:[%s3723_s18 + $0x420] sm:$0xff] (%p3474_p11)  ;;  %v2263_v45 = vld [vmem:[%s3723_s18 + $0x428] sm:$0xff] (%p3474_p11) }
 0x21f   : > { %2611 = vst.msk [vmem:[%s3723_s18 + $0x518] sm:$0xff] %vm496_vm0, %v1456_v43  ;;  %2610 = vst.msk [vmem:[%s3723_s18 + $0x510] sm:$0xff] %vm496_vm0, %v1454_v10  ;;  %v2009_v43 = vld [vmem:[%s3723_s18 + $0x30] sm:$0xff] (%p3474_p11)  ;;  %v2011_v10 = vld [vmem:[%s3723_s18 + $0x38] sm:$0xff] (%p3474_p11) }
 0x220   : > { %2010 = vst [vmem:[%s4622_s20 + $0x30] sm:$0xff] (%p3474_p11), %v2009_v43  ;;  %2012 = vst [vmem:[%s4622_s20 + $0x38] sm:$0xff] (%p3474_p11), %v2011_v10  ;;  %v2137_v43 = vld [vmem:[%s3723_s18 + $0x230] sm:$0xff] (%p3474_p11)  ;;  %v2139_v10 = vld [vmem:[%s3723_s18 + $0x238] sm:$0xff] (%p3474_p11) }
 0x221   : > { %2138 = vst [vmem:[%s4622_s20 + $0x430] sm:$0xff] (%p3474_p11), %v2137_v43  ;;  %2140 = vst [vmem:[%s4622_s20 + $0x438] sm:$0xff] (%p3474_p11), %v2139_v10  ;;  %v2265_v43 = vld [vmem:[%s3723_s18 + $0x430] sm:$0xff] (%p3474_p11)  ;;  %v2267_v10 = vld [vmem:[%s3723_s18 + $0x438] sm:$0xff] (%p3474_p11) }
 0x222   : > { %v1016_v61 = vpop.permute.xlu1 %1015  ;;  %v1014_v1 = vpop.permute.xlu0 %1013  ;;  %2262 = vst [vmem:[%s4622_s20 + $0x820] sm:$0xff] (%p3474_p11), %v2261_v41  ;;  %2264 = vst [vmem:[%s4622_s20 + $0x828] sm:$0xff] (%p3474_p11), %v2263_v45 }
 0x223   : > { %2548 = vst.msk [vmem:[%s3723_s18 + $0x328] sm:$0xff] %vm496_vm0, %v1016_v61  ;;  %2547 = vst.msk [vmem:[%s3723_s18 + $0x320] sm:$0xff] %vm496_vm0, %v1014_v1  ;;  %v2013_v61 = vld [vmem:[%s3723_s18 + $0x40] sm:$0xff] (%p3474_p11)  ;;  %v2015_v1 = vld [vmem:[%s3723_s18 + $0x48] sm:$0xff] (%p3474_p11) }
 0x224   : > { %2014 = vst [vmem:[%s4622_s20 + $0x40] sm:$0xff] (%p3474_p11), %v2013_v61  ;;  %2016 = vst [vmem:[%s4622_s20 + $0x48] sm:$0xff] (%p3474_p11), %v2015_v1  ;;  %v2141_v61 = vld [vmem:[%s3723_s18 + $0x240] sm:$0xff] (%p3474_p11)  ;;  %v2143_v1 = vld [vmem:[%s3723_s18 + $0x248] sm:$0xff] (%p3474_p11) }
 0x225   : > { %2142 = vst [vmem:[%s4622_s20 + $0x440] sm:$0xff] (%p3474_p11), %v2141_v61  ;;  %2144 = vst [vmem:[%s4622_s20 + $0x448] sm:$0xff] (%p3474_p11), %v2143_v1  ;;  %v2269_v61 = vld [vmem:[%s3723_s18 + $0x440] sm:$0xff] (%p3474_p11)  ;;  %v2271_v1 = vld [vmem:[%s3723_s18 + $0x448] sm:$0xff] (%p3474_p11) }
 0x226   : > { %v1460_v52 = vpop.permute.xlu1 %1459  ;;  %v1458_v56 = vpop.permute.xlu0 %1457  ;;  %2266 = vst [vmem:[%s4622_s20 + $0x830] sm:$0xff] (%p3474_p11), %v2265_v43  ;;  %2268 = vst [vmem:[%s4622_s20 + $0x838] sm:$0xff] (%p3474_p11), %v2267_v10 }
 0x227   : > { %2613 = vst.msk [vmem:[%s3723_s18 + $0x528] sm:$0xff] %vm496_vm0, %v1460_v52  ;;  %2612 = vst.msk [vmem:[%s3723_s18 + $0x520] sm:$0xff] %vm496_vm0, %v1458_v56  ;;  %v2017_v52 = vld [vmem:[%s3723_s18 + $0x50] sm:$0xff] (%p3474_p11)  ;;  %v2019_v56 = vld [vmem:[%s3723_s18 + $0x58] sm:$0xff] (%p3474_p11) }
 0x228   : > { %2018 = vst [vmem:[%s4622_s20 + $0x50] sm:$0xff] (%p3474_p11), %v2017_v52  ;;  %2020 = vst [vmem:[%s4622_s20 + $0x58] sm:$0xff] (%p3474_p11), %v2019_v56  ;;  %v2145_v52 = vld [vmem:[%s3723_s18 + $0x250] sm:$0xff] (%p3474_p11)  ;;  %v2147_v56 = vld [vmem:[%s3723_s18 + $0x258] sm:$0xff] (%p3474_p11) }
 0x229   : > { %2146 = vst [vmem:[%s4622_s20 + $0x450] sm:$0xff] (%p3474_p11), %v2145_v52  ;;  %2148 = vst [vmem:[%s4622_s20 + $0x458] sm:$0xff] (%p3474_p11), %v2147_v56  ;;  %v2273_v52 = vld [vmem:[%s3723_s18 + $0x450] sm:$0xff] (%p3474_p11)  ;;  %v2275_v56 = vld [vmem:[%s3723_s18 + $0x458] sm:$0xff] (%p3474_p11) }
 0x22a   : > { %v1020_v39 = vpop.permute.xlu1 %1019  ;;  %v1018_v49 = vpop.permute.xlu0 %1017  ;;  %2270 = vst [vmem:[%s4622_s20 + $0x840] sm:$0xff] (%p3474_p11), %v2269_v61  ;;  %2272 = vst [vmem:[%s4622_s20 + $0x848] sm:$0xff] (%p3474_p11), %v2271_v1 }
 0x22b   : > { %2550 = vst.msk [vmem:[%s3723_s18 + $0x338] sm:$0xff] %vm496_vm0, %v1020_v39  ;;  %2549 = vst.msk [vmem:[%s3723_s18 + $0x330] sm:$0xff] %vm496_vm0, %v1018_v49  ;;  %v2021_v39 = vld [vmem:[%s3723_s18 + $0x60] sm:$0xff] (%p3474_p11)  ;;  %v2023_v49 = vld [vmem:[%s3723_s18 + $0x68] sm:$0xff] (%p3474_p11) }
 0x22c   : > { %2022 = vst [vmem:[%s4622_s20 + $0x60] sm:$0xff] (%p3474_p11), %v2021_v39  ;;  %2024 = vst [vmem:[%s4622_s20 + $0x68] sm:$0xff] (%p3474_p11), %v2023_v49  ;;  %v2149_v39 = vld [vmem:[%s3723_s18 + $0x260] sm:$0xff] (%p3474_p11)  ;;  %v2151_v49 = vld [vmem:[%s3723_s18 + $0x268] sm:$0xff] (%p3474_p11) }
 0x22d   : > { %2150 = vst [vmem:[%s4622_s20 + $0x460] sm:$0xff] (%p3474_p11), %v2149_v39  ;;  %2152 = vst [vmem:[%s4622_s20 + $0x468] sm:$0xff] (%p3474_p11), %v2151_v49  ;;  %v2277_v39 = vld [vmem:[%s3723_s18 + $0x460] sm:$0xff] (%p3474_p11)  ;;  %v2279_v49 = vld [vmem:[%s3723_s18 + $0x468] sm:$0xff] (%p3474_p11) }
 0x22e   : > { %v1464_v0 = vpop.permute.xlu1 %1463  ;;  %v1462_v4 = vpop.permute.xlu0 %1461  ;;  %2274 = vst [vmem:[%s4622_s20 + $0x850] sm:$0xff] (%p3474_p11), %v2273_v52  ;;  %2276 = vst [vmem:[%s4622_s20 + $0x858] sm:$0xff] (%p3474_p11), %v2275_v56 }
 0x22f   : > { %2615 = vst.msk [vmem:[%s3723_s18 + $0x538] sm:$0xff] %vm496_vm0, %v1464_v0  ;;  %2614 = vst.msk [vmem:[%s3723_s18 + $0x530] sm:$0xff] %vm496_vm0, %v1462_v4  ;;  %v2025_v0 = vld [vmem:[%s3723_s18 + $0x70] sm:$0xff] (%p3474_p11)  ;;  %v2027_v4 = vld [vmem:[%s3723_s18 + $0x78] sm:$0xff] (%p3474_p11) }
 0x230   : > { %2026 = vst [vmem:[%s4622_s20 + $0x70] sm:$0xff] (%p3474_p11), %v2025_v0  ;;  %2028 = vst [vmem:[%s4622_s20 + $0x78] sm:$0xff] (%p3474_p11), %v2027_v4  ;;  %v2153_v0 = vld [vmem:[%s3723_s18 + $0x270] sm:$0xff] (%p3474_p11)  ;;  %v2155_v4 = vld [vmem:[%s3723_s18 + $0x278] sm:$0xff] (%p3474_p11) }
 0x231   : > { %2154 = vst [vmem:[%s4622_s20 + $0x470] sm:$0xff] (%p3474_p11), %v2153_v0  ;;  %2156 = vst [vmem:[%s4622_s20 + $0x478] sm:$0xff] (%p3474_p11), %v2155_v4  ;;  %v2281_v0 = vld [vmem:[%s3723_s18 + $0x470] sm:$0xff] (%p3474_p11)  ;;  %v2283_v4 = vld [vmem:[%s3723_s18 + $0x478] sm:$0xff] (%p3474_p11) }
 0x232   : > { %v1024_v63 = vpop.permute.xlu1 %1023  ;;  %v1022_v2 = vpop.permute.xlu0 %1021  ;;  %2278 = vst [vmem:[%s4622_s20 + $0x860] sm:$0xff] (%p3474_p11), %v2277_v39  ;;  %2280 = vst [vmem:[%s4622_s20 + $0x868] sm:$0xff] (%p3474_p11), %v2279_v49 }
 0x233   : > { %2552 = vst.msk [vmem:[%s3723_s18 + $0x348] sm:$0xff] %vm496_vm0, %v1024_v63  ;;  %2551 = vst.msk [vmem:[%s3723_s18 + $0x340] sm:$0xff] %vm496_vm0, %v1022_v2  ;;  %v2029_v63 = vld [vmem:[%s3723_s18 + $0x80] sm:$0xff] (%p3474_p11)  ;;  %v2031_v2 = vld [vmem:[%s3723_s18 + $0x88] sm:$0xff] (%p3474_p11) }
 0x234   : > { %2030 = vst [vmem:[%s4622_s20 + $0x80] sm:$0xff] (%p3474_p11), %v2029_v63  ;;  %2032 = vst [vmem:[%s4622_s20 + $0x88] sm:$0xff] (%p3474_p11), %v2031_v2  ;;  %v2157_v63 = vld [vmem:[%s3723_s18 + $0x280] sm:$0xff] (%p3474_p11)  ;;  %v2159_v2 = vld [vmem:[%s3723_s18 + $0x288] sm:$0xff] (%p3474_p11) }
 0x235   : > { %2158 = vst [vmem:[%s4622_s20 + $0x480] sm:$0xff] (%p3474_p11), %v2157_v63  ;;  %2160 = vst [vmem:[%s4622_s20 + $0x488] sm:$0xff] (%p3474_p11), %v2159_v2  ;;  %v2285_v63 = vld [vmem:[%s3723_s18 + $0x480] sm:$0xff] (%p3474_p11)  ;;  %v2287_v2 = vld [vmem:[%s3723_s18 + $0x488] sm:$0xff] (%p3474_p11) }
 0x236   : > { %v1468_v47 = vpop.permute.xlu1 %1467  ;;  %v1466_v50 = vpop.permute.xlu0 %1465  ;;  %2282 = vst [vmem:[%s4622_s20 + $0x870] sm:$0xff] (%p3474_p11), %v2281_v0  ;;  %2284 = vst [vmem:[%s4622_s20 + $0x878] sm:$0xff] (%p3474_p11), %v2283_v4 }
 0x237   : > { %2617 = vst.msk [vmem:[%s3723_s18 + $0x548] sm:$0xff] %vm496_vm0, %v1468_v47  ;;  %2616 = vst.msk [vmem:[%s3723_s18 + $0x540] sm:$0xff] %vm496_vm0, %v1466_v50  ;;  %v2033_v47 = vld [vmem:[%s3723_s18 + $0x90] sm:$0xff] (%p3474_p11)  ;;  %v2035_v50 = vld [vmem:[%s3723_s18 + $0x98] sm:$0xff] (%p3474_p11) }
 0x238   : > { %2034 = vst [vmem:[%s4622_s20 + $0x90] sm:$0xff] (%p3474_p11), %v2033_v47  ;;  %2036 = vst [vmem:[%s4622_s20 + $0x98] sm:$0xff] (%p3474_p11), %v2035_v50  ;;  %v2161_v47 = vld [vmem:[%s3723_s18 + $0x290] sm:$0xff] (%p3474_p11)  ;;  %v2163_v50 = vld [vmem:[%s3723_s18 + $0x298] sm:$0xff] (%p3474_p11) }
 0x239   : > { %2162 = vst [vmem:[%s4622_s20 + $0x490] sm:$0xff] (%p3474_p11), %v2161_v47  ;;  %2164 = vst [vmem:[%s4622_s20 + $0x498] sm:$0xff] (%p3474_p11), %v2163_v50  ;;  %v2289_v47 = vld [vmem:[%s3723_s18 + $0x490] sm:$0xff] (%p3474_p11)  ;;  %v2291_v50 = vld [vmem:[%s3723_s18 + $0x498] sm:$0xff] (%p3474_p11) }
 0x23a   : > { %v1028_v14 = vpop.permute.xlu1 %1027  ;;  %v1026_v18 = vpop.permute.xlu0 %1025  ;;  %2286 = vst [vmem:[%s4622_s20 + $0x880] sm:$0xff] (%p3474_p11), %v2285_v63  ;;  %2288 = vst [vmem:[%s4622_s20 + $0x888] sm:$0xff] (%p3474_p11), %v2287_v2 }
 0x23b   : > { %2554 = vst.msk [vmem:[%s3723_s18 + $0x358] sm:$0xff] %vm496_vm0, %v1028_v14  ;;  %2553 = vst.msk [vmem:[%s3723_s18 + $0x350] sm:$0xff] %vm496_vm0, %v1026_v18  ;;  %v2037_v14 = vld [vmem:[%s3723_s18 + $0xa0] sm:$0xff] (%p3474_p11)  ;;  %v2039_v18 = vld [vmem:[%s3723_s18 + $0xa8] sm:$0xff] (%p3474_p11) }
 0x23c   : > { %2038 = vst [vmem:[%s4622_s20 + $0xa0] sm:$0xff] (%p3474_p11), %v2037_v14  ;;  %2040 = vst [vmem:[%s4622_s20 + $0xa8] sm:$0xff] (%p3474_p11), %v2039_v18  ;;  %v2165_v14 = vld [vmem:[%s3723_s18 + $0x2a0] sm:$0xff] (%p3474_p11)  ;;  %v2167_v18 = vld [vmem:[%s3723_s18 + $0x2a8] sm:$0xff] (%p3474_p11) }
 0x23d   : > { %2166 = vst [vmem:[%s4622_s20 + $0x4a0] sm:$0xff] (%p3474_p11), %v2165_v14  ;;  %2168 = vst [vmem:[%s4622_s20 + $0x4a8] sm:$0xff] (%p3474_p11), %v2167_v18  ;;  %v2293_v14 = vld [vmem:[%s3723_s18 + $0x4a0] sm:$0xff] (%p3474_p11)  ;;  %v2295_v18 = vld [vmem:[%s3723_s18 + $0x4a8] sm:$0xff] (%p3474_p11) }
 0x23e   : > { %v1472_v53 = vpop.permute.xlu1 %1471  ;;  %v1470_v57 = vpop.permute.xlu0 %1469  ;;  %2290 = vst [vmem:[%s4622_s20 + $0x890] sm:$0xff] (%p3474_p11), %v2289_v47  ;;  %2292 = vst [vmem:[%s4622_s20 + $0x898] sm:$0xff] (%p3474_p11), %v2291_v50 }
 0x23f   : > { %2619 = vst.msk [vmem:[%s3723_s18 + $0x558] sm:$0xff] %vm496_vm0, %v1472_v53  ;;  %2618 = vst.msk [vmem:[%s3723_s18 + $0x550] sm:$0xff] %vm496_vm0, %v1470_v57  ;;  %v2041_v53 = vld [vmem:[%s3723_s18 + $0xb0] sm:$0xff] (%p3474_p11)  ;;  %v2043_v57 = vld [vmem:[%s3723_s18 + $0xb8] sm:$0xff] (%p3474_p11) }
 0x240   : > { %2042 = vst [vmem:[%s4622_s20 + $0xb0] sm:$0xff] (%p3474_p11), %v2041_v53  ;;  %2044 = vst [vmem:[%s4622_s20 + $0xb8] sm:$0xff] (%p3474_p11), %v2043_v57  ;;  %v2169_v53 = vld [vmem:[%s3723_s18 + $0x2b0] sm:$0xff] (%p3474_p11)  ;;  %v2171_v57 = vld [vmem:[%s3723_s18 + $0x2b8] sm:$0xff] (%p3474_p11) }
 0x241   : > { %2170 = vst [vmem:[%s4622_s20 + $0x4b0] sm:$0xff] (%p3474_p11), %v2169_v53  ;;  %2172 = vst [vmem:[%s4622_s20 + $0x4b8] sm:$0xff] (%p3474_p11), %v2171_v57  ;;  %v2297_v53 = vld [vmem:[%s3723_s18 + $0x4b0] sm:$0xff] (%p3474_p11)  ;;  %v2299_v57 = vld [vmem:[%s3723_s18 + $0x4b8] sm:$0xff] (%p3474_p11) }
 0x242   : > { %v1032_v5 = vpop.permute.xlu1 %1031  ;;  %v1030_v11 = vpop.permute.xlu0 %1029  ;;  %2294 = vst [vmem:[%s4622_s20 + $0x8a0] sm:$0xff] (%p3474_p11), %v2293_v14  ;;  %2296 = vst [vmem:[%s4622_s20 + $0x8a8] sm:$0xff] (%p3474_p11), %v2295_v18 }
 0x243   : > { %2556 = vst.msk [vmem:[%s3723_s18 + $0x368] sm:$0xff] %vm496_vm0, %v1032_v5  ;;  %2555 = vst.msk [vmem:[%s3723_s18 + $0x360] sm:$0xff] %vm496_vm0, %v1030_v11  ;;  %v2045_v5 = vld [vmem:[%s3723_s18 + $0xc0] sm:$0xff] (%p3474_p11)  ;;  %v2047_v11 = vld [vmem:[%s3723_s18 + $0xc8] sm:$0xff] (%p3474_p11) }
 0x244   : > { %2046 = vst [vmem:[%s4622_s20 + $0xc0] sm:$0xff] (%p3474_p11), %v2045_v5  ;;  %2048 = vst [vmem:[%s4622_s20 + $0xc8] sm:$0xff] (%p3474_p11), %v2047_v11  ;;  %v2173_v5 = vld [vmem:[%s3723_s18 + $0x2c0] sm:$0xff] (%p3474_p11)  ;;  %v2175_v11 = vld [vmem:[%s3723_s18 + $0x2c8] sm:$0xff] (%p3474_p11) }
 0x245   : > { %2174 = vst [vmem:[%s4622_s20 + $0x4c0] sm:$0xff] (%p3474_p11), %v2173_v5  ;;  %2176 = vst [vmem:[%s4622_s20 + $0x4c8] sm:$0xff] (%p3474_p11), %v2175_v11  ;;  %v2301_v5 = vld [vmem:[%s3723_s18 + $0x4c0] sm:$0xff] (%p3474_p11)  ;;  %v2303_v11 = vld [vmem:[%s3723_s18 + $0x4c8] sm:$0xff] (%p3474_p11) }
 0x246   : > { %v1476_v26 = vpop.permute.xlu1 %1475  ;;  %v1474_v30 = vpop.permute.xlu0 %1473  ;;  %2298 = vst [vmem:[%s4622_s20 + $0x8b0] sm:$0xff] (%p3474_p11), %v2297_v53  ;;  %2300 = vst [vmem:[%s4622_s20 + $0x8b8] sm:$0xff] (%p3474_p11), %v2299_v57 }
 0x247   : > { %2621 = vst.msk [vmem:[%s3723_s18 + $0x568] sm:$0xff] %vm496_vm0, %v1476_v26  ;;  %2620 = vst.msk [vmem:[%s3723_s18 + $0x560] sm:$0xff] %vm496_vm0, %v1474_v30  ;;  %v2049_v26 = vld [vmem:[%s3723_s18 + $0xd0] sm:$0xff] (%p3474_p11)  ;;  %v2051_v30 = vld [vmem:[%s3723_s18 + $0xd8] sm:$0xff] (%p3474_p11) }
 0x248   : > { %2050 = vst [vmem:[%s4622_s20 + $0xd0] sm:$0xff] (%p3474_p11), %v2049_v26  ;;  %2052 = vst [vmem:[%s4622_s20 + $0xd8] sm:$0xff] (%p3474_p11), %v2051_v30  ;;  %v2177_v26 = vld [vmem:[%s3723_s18 + $0x2d0] sm:$0xff] (%p3474_p11)  ;;  %v2179_v30 = vld [vmem:[%s3723_s18 + $0x2d8] sm:$0xff] (%p3474_p11) }
 0x249   : > { %2178 = vst [vmem:[%s4622_s20 + $0x4d0] sm:$0xff] (%p3474_p11), %v2177_v26  ;;  %2180 = vst [vmem:[%s4622_s20 + $0x4d8] sm:$0xff] (%p3474_p11), %v2179_v30  ;;  %v2305_v26 = vld [vmem:[%s3723_s18 + $0x4d0] sm:$0xff] (%p3474_p11)  ;;  %v2307_v30 = vld [vmem:[%s3723_s18 + $0x4d8] sm:$0xff] (%p3474_p11) }
 0x24a   : > { %v1036_v55 = vpop.permute.xlu1 %1035  ;;  %v1034_v58 = vpop.permute.xlu0 %1033  ;;  %2302 = vst [vmem:[%s4622_s20 + $0x8c0] sm:$0xff] (%p3474_p11), %v2301_v5  ;;  %2304 = vst [vmem:[%s4622_s20 + $0x8c8] sm:$0xff] (%p3474_p11), %v2303_v11 }
 0x24b   : > { %2558 = vst.msk [vmem:[%s3723_s18 + $0x378] sm:$0xff] %vm496_vm0, %v1036_v55  ;;  %2557 = vst.msk [vmem:[%s3723_s18 + $0x370] sm:$0xff] %vm496_vm0, %v1034_v58  ;;  %v2053_v55 = vld [vmem:[%s3723_s18 + $0xe0] sm:$0xff] (%p3474_p11)  ;;  %v2055_v58 = vld [vmem:[%s3723_s18 + $0xe8] sm:$0xff] (%p3474_p11) }
 0x24c   : > { %2054 = vst [vmem:[%s4622_s20 + $0xe0] sm:$0xff] (%p3474_p11), %v2053_v55  ;;  %2056 = vst [vmem:[%s4622_s20 + $0xe8] sm:$0xff] (%p3474_p11), %v2055_v58  ;;  %v2181_v55 = vld [vmem:[%s3723_s18 + $0x2e0] sm:$0xff] (%p3474_p11)  ;;  %v2183_v58 = vld [vmem:[%s3723_s18 + $0x2e8] sm:$0xff] (%p3474_p11) }
 0x24d   : > { %2182 = vst [vmem:[%s4622_s20 + $0x4e0] sm:$0xff] (%p3474_p11), %v2181_v55  ;;  %2184 = vst [vmem:[%s4622_s20 + $0x4e8] sm:$0xff] (%p3474_p11), %v2183_v58  ;;  %v2309_v55 = vld [vmem:[%s3723_s18 + $0x4e0] sm:$0xff] (%p3474_p11)  ;;  %v2311_v58 = vld [vmem:[%s3723_s18 + $0x4e8] sm:$0xff] (%p3474_p11) }
 0x24e   : > { %v1480_v42 = vpop.permute.xlu1 %1479  ;;  %v1478_v38 = vpop.permute.xlu0 %1477  ;;  %2306 = vst [vmem:[%s4622_s20 + $0x8d0] sm:$0xff] (%p3474_p11), %v2305_v26  ;;  %2308 = vst [vmem:[%s4622_s20 + $0x8d8] sm:$0xff] (%p3474_p11), %v2307_v30 }
 0x24f   : > { %2623 = vst.msk [vmem:[%s3723_s18 + $0x578] sm:$0xff] %vm496_vm0, %v1480_v42  ;;  %2622 = vst.msk [vmem:[%s3723_s18 + $0x570] sm:$0xff] %vm496_vm0, %v1478_v38  ;;  %v2057_v42 = vld [vmem:[%s3723_s18 + $0xf0] sm:$0xff] (%p3474_p11)  ;;  %v2059_v38 = vld [vmem:[%s3723_s18 + $0xf8] sm:$0xff] (%p3474_p11) }
 0x250   : > { %2058 = vst [vmem:[%s4622_s20 + $0xf0] sm:$0xff] (%p3474_p11), %v2057_v42  ;;  %2060 = vst [vmem:[%s4622_s20 + $0xf8] sm:$0xff] (%p3474_p11), %v2059_v38  ;;  %v2185_v42 = vld [vmem:[%s3723_s18 + $0x2f0] sm:$0xff] (%p3474_p11)  ;;  %v2187_v38 = vld [vmem:[%s3723_s18 + $0x2f8] sm:$0xff] (%p3474_p11) }
 0x251   : > { %2186 = vst [vmem:[%s4622_s20 + $0x4f0] sm:$0xff] (%p3474_p11), %v2185_v42  ;;  %2188 = vst [vmem:[%s4622_s20 + $0x4f8] sm:$0xff] (%p3474_p11), %v2187_v38  ;;  %v2313_v42 = vld [vmem:[%s3723_s18 + $0x4f0] sm:$0xff] (%p3474_p11)  ;;  %v2315_v38 = vld [vmem:[%s3723_s18 + $0x4f8] sm:$0xff] (%p3474_p11) }
 0x252   : > { %v1040_v36 = vpop.permute.xlu1 %1039  ;;  %v1038_v37 = vpop.permute.xlu0 %1037  ;;  %2310 = vst [vmem:[%s4622_s20 + $0x8e0] sm:$0xff] (%p3474_p11), %v2309_v55  ;;  %2312 = vst [vmem:[%s4622_s20 + $0x8e8] sm:$0xff] (%p3474_p11), %v2311_v58 }
 0x253   : > { %2560 = vst.msk [vmem:[%s3723_s18 + $0x388] sm:$0xff] %vm496_vm0, %v1040_v36  ;;  %2559 = vst.msk [vmem:[%s3723_s18 + $0x380] sm:$0xff] %vm496_vm0, %v1038_v37  ;;  %v2061_v36 = vld [vmem:[%s3723_s18 + $0x100] sm:$0xff] (%p3474_p11)  ;;  %v2063_v37 = vld [vmem:[%s3723_s18 + $0x108] sm:$0xff] (%p3474_p11) }
 0x254   : > { %2062 = vst [vmem:[%s4622_s20 + $0x200] sm:$0xff] (%p3474_p11), %v2061_v36  ;;  %2064 = vst [vmem:[%s4622_s20 + $0x208] sm:$0xff] (%p3474_p11), %v2063_v37  ;;  %v2189_v36 = vld [vmem:[%s3723_s18 + $0x300] sm:$0xff] (%p3474_p11)  ;;  %v2191_v37 = vld [vmem:[%s3723_s18 + $0x308] sm:$0xff] (%p3474_p11) }
 0x255   : > { %2190 = vst [vmem:[%s4622_s20 + $0x600] sm:$0xff] (%p3474_p11), %v2189_v36  ;;  %2192 = vst [vmem:[%s4622_s20 + $0x608] sm:$0xff] (%p3474_p11), %v2191_v37  ;;  %v2317_v36 = vld [vmem:[%s3723_s18 + $0x500] sm:$0xff] (%p3474_p11)  ;;  %v2319_v37 = vld [vmem:[%s3723_s18 + $0x508] sm:$0xff] (%p3474_p11) }
 0x256   : > { %v1484_v7 = vpop.permute.xlu1 %1483  ;;  %v1482_v12 = vpop.permute.xlu0 %1481  ;;  %2314 = vst [vmem:[%s4622_s20 + $0x8f0] sm:$0xff] (%p3474_p11), %v2313_v42  ;;  %2316 = vst [vmem:[%s4622_s20 + $0x8f8] sm:$0xff] (%p3474_p11), %v2315_v38 }
 0x257   : > { %2625 = vst.msk [vmem:[%s3723_s18 + $0x588] sm:$0xff] %vm496_vm0, %v1484_v7  ;;  %2624 = vst.msk [vmem:[%s3723_s18 + $0x580] sm:$0xff] %vm496_vm0, %v1482_v12  ;;  %v2065_v7 = vld [vmem:[%s3723_s18 + $0x110] sm:$0xff] (%p3474_p11)  ;;  %v2067_v12 = vld [vmem:[%s3723_s18 + $0x118] sm:$0xff] (%p3474_p11) }
 0x258   : > { %2066 = vst [vmem:[%s4622_s20 + $0x210] sm:$0xff] (%p3474_p11), %v2065_v7  ;;  %2068 = vst [vmem:[%s4622_s20 + $0x218] sm:$0xff] (%p3474_p11), %v2067_v12  ;;  %v2193_v7 = vld [vmem:[%s3723_s18 + $0x310] sm:$0xff] (%p3474_p11)  ;;  %v2195_v12 = vld [vmem:[%s3723_s18 + $0x318] sm:$0xff] (%p3474_p11) }
 0x259   : > { %2194 = vst [vmem:[%s4622_s20 + $0x610] sm:$0xff] (%p3474_p11), %v2193_v7  ;;  %2196 = vst [vmem:[%s4622_s20 + $0x618] sm:$0xff] (%p3474_p11), %v2195_v12  ;;  %v2321_v7 = vld [vmem:[%s3723_s18 + $0x510] sm:$0xff] (%p3474_p11)  ;;  %v2323_v12 = vld [vmem:[%s3723_s18 + $0x518] sm:$0xff] (%p3474_p11) }
 0x25a   : > { %v1044_v15 = vpop.permute.xlu1 %1043  ;;  %v1042_v17 = vpop.permute.xlu0 %1041  ;;  %2318 = vst [vmem:[%s4622_s20 + $0xa00] sm:$0xff] (%p3474_p11), %v2317_v36  ;;  %2320 = vst [vmem:[%s4622_s20 + $0xa08] sm:$0xff] (%p3474_p11), %v2319_v37 }
 0x25b   : > { %2562 = vst.msk [vmem:[%s3723_s18 + $0x398] sm:$0xff] %vm496_vm0, %v1044_v15  ;;  %2561 = vst.msk [vmem:[%s3723_s18 + $0x390] sm:$0xff] %vm496_vm0, %v1042_v17  ;;  %v2069_v15 = vld [vmem:[%s3723_s18 + $0x120] sm:$0xff] (%p3474_p11)  ;;  %v2071_v17 = vld [vmem:[%s3723_s18 + $0x128] sm:$0xff] (%p3474_p11) }
 0x25c   : > { %2070 = vst [vmem:[%s4622_s20 + $0x220] sm:$0xff] (%p3474_p11), %v2069_v15  ;;  %2072 = vst [vmem:[%s4622_s20 + $0x228] sm:$0xff] (%p3474_p11), %v2071_v17  ;;  %v2197_v15 = vld [vmem:[%s3723_s18 + $0x320] sm:$0xff] (%p3474_p11)  ;;  %v2199_v17 = vld [vmem:[%s3723_s18 + $0x328] sm:$0xff] (%p3474_p11) }
 0x25d   : > { %2198 = vst [vmem:[%s4622_s20 + $0x620] sm:$0xff] (%p3474_p11), %v2197_v15  ;;  %2200 = vst [vmem:[%s4622_s20 + $0x628] sm:$0xff] (%p3474_p11), %v2199_v17  ;;  %v2325_v15 = vld [vmem:[%s3723_s18 + $0x520] sm:$0xff] (%p3474_p11)  ;;  %v2327_v17 = vld [vmem:[%s3723_s18 + $0x528] sm:$0xff] (%p3474_p11) }
 0x25e   : > { %v1488_v19 = vpop.permute.xlu1 %1487  ;;  %v1486_v20 = vpop.permute.xlu0 %1485  ;;  %2322 = vst [vmem:[%s4622_s20 + $0xa10] sm:$0xff] (%p3474_p11), %v2321_v7  ;;  %2324 = vst [vmem:[%s4622_s20 + $0xa18] sm:$0xff] (%p3474_p11), %v2323_v12 }
 0x25f   : > { %2627 = vst.msk [vmem:[%s3723_s18 + $0x598] sm:$0xff] %vm496_vm0, %v1488_v19  ;;  %2626 = vst.msk [vmem:[%s3723_s18 + $0x590] sm:$0xff] %vm496_vm0, %v1486_v20  ;;  %v2073_v19 = vld [vmem:[%s3723_s18 + $0x130] sm:$0xff] (%p3474_p11)  ;;  %v2075_v20 = vld [vmem:[%s3723_s18 + $0x138] sm:$0xff] (%p3474_p11) }
 0x260   : > { %2074 = vst [vmem:[%s4622_s20 + $0x230] sm:$0xff] (%p3474_p11), %v2073_v19  ;;  %2076 = vst [vmem:[%s4622_s20 + $0x238] sm:$0xff] (%p3474_p11), %v2075_v20  ;;  %v2201_v19 = vld [vmem:[%s3723_s18 + $0x330] sm:$0xff] (%p3474_p11)  ;;  %v2203_v20 = vld [vmem:[%s3723_s18 + $0x338] sm:$0xff] (%p3474_p11) }
 0x261   : > { %2202 = vst [vmem:[%s4622_s20 + $0x630] sm:$0xff] (%p3474_p11), %v2201_v19  ;;  %2204 = vst [vmem:[%s4622_s20 + $0x638] sm:$0xff] (%p3474_p11), %v2203_v20  ;;  %v2329_v19 = vld [vmem:[%s3723_s18 + $0x530] sm:$0xff] (%p3474_p11)  ;;  %v2331_v20 = vld [vmem:[%s3723_s18 + $0x538] sm:$0xff] (%p3474_p11) }
 0x262   : > { %v1048_v23 = vpop.permute.xlu1 %1047  ;;  %v1046_v25 = vpop.permute.xlu0 %1045  ;;  %2326 = vst [vmem:[%s4622_s20 + $0xa20] sm:$0xff] (%p3474_p11), %v2325_v15  ;;  %2328 = vst [vmem:[%s4622_s20 + $0xa28] sm:$0xff] (%p3474_p11), %v2327_v17 }
 0x263   : > { %2564 = vst.msk [vmem:[%s3723_s18 + $0x3a8] sm:$0xff] %vm496_vm0, %v1048_v23  ;;  %2563 = vst.msk [vmem:[%s3723_s18 + $0x3a0] sm:$0xff] %vm496_vm0, %v1046_v25  ;;  %v2077_v23 = vld [vmem:[%s3723_s18 + $0x140] sm:$0xff] (%p3474_p11)  ;;  %v2079_v25 = vld [vmem:[%s3723_s18 + $0x148] sm:$0xff] (%p3474_p11) }
 0x264   : > { %2078 = vst [vmem:[%s4622_s20 + $0x240] sm:$0xff] (%p3474_p11), %v2077_v23  ;;  %2080 = vst [vmem:[%s4622_s20 + $0x248] sm:$0xff] (%p3474_p11), %v2079_v25  ;;  %v2205_v23 = vld [vmem:[%s3723_s18 + $0x340] sm:$0xff] (%p3474_p11)  ;;  %v2207_v25 = vld [vmem:[%s3723_s18 + $0x348] sm:$0xff] (%p3474_p11) }
 0x265   : > { %2206 = vst [vmem:[%s4622_s20 + $0x640] sm:$0xff] (%p3474_p11), %v2205_v23  ;;  %2208 = vst [vmem:[%s4622_s20 + $0x648] sm:$0xff] (%p3474_p11), %v2207_v25  ;;  %v2333_v23 = vld [vmem:[%s3723_s18 + $0x540] sm:$0xff] (%p3474_p11)  ;;  %v2335_v25 = vld [vmem:[%s3723_s18 + $0x548] sm:$0xff] (%p3474_p11) }
 0x266   : > { %v1492_v27 = vpop.permute.xlu1 %1491  ;;  %v1490_v28 = vpop.permute.xlu0 %1489  ;;  %2330 = vst [vmem:[%s4622_s20 + $0xa30] sm:$0xff] (%p3474_p11), %v2329_v19  ;;  %2332 = vst [vmem:[%s4622_s20 + $0xa38] sm:$0xff] (%p3474_p11), %v2331_v20 }
 0x267   : > { %2629 = vst.msk [vmem:[%s3723_s18 + $0x5a8] sm:$0xff] %vm496_vm0, %v1492_v27  ;;  %2628 = vst.msk [vmem:[%s3723_s18 + $0x5a0] sm:$0xff] %vm496_vm0, %v1490_v28  ;;  %v2081_v27 = vld [vmem:[%s3723_s18 + $0x150] sm:$0xff] (%p3474_p11)  ;;  %v2083_v28 = vld [vmem:[%s3723_s18 + $0x158] sm:$0xff] (%p3474_p11) }
 0x268   : > { %2082 = vst [vmem:[%s4622_s20 + $0x250] sm:$0xff] (%p3474_p11), %v2081_v27  ;;  %2084 = vst [vmem:[%s4622_s20 + $0x258] sm:$0xff] (%p3474_p11), %v2083_v28  ;;  %v2209_v27 = vld [vmem:[%s3723_s18 + $0x350] sm:$0xff] (%p3474_p11)  ;;  %v2211_v28 = vld [vmem:[%s3723_s18 + $0x358] sm:$0xff] (%p3474_p11) }
 0x269   : > { %2210 = vst [vmem:[%s4622_s20 + $0x650] sm:$0xff] (%p3474_p11), %v2209_v27  ;;  %2212 = vst [vmem:[%s4622_s20 + $0x658] sm:$0xff] (%p3474_p11), %v2211_v28  ;;  %v2337_v27 = vld [vmem:[%s3723_s18 + $0x550] sm:$0xff] (%p3474_p11)  ;;  %v2339_v28 = vld [vmem:[%s3723_s18 + $0x558] sm:$0xff] (%p3474_p11) }
 0x26a   : > { %v1052_v31 = vpop.permute.xlu1 %1051  ;;  %v1050_v33 = vpop.permute.xlu0 %1049  ;;  %2334 = vst [vmem:[%s4622_s20 + $0xa40] sm:$0xff] (%p3474_p11), %v2333_v23  ;;  %2336 = vst [vmem:[%s4622_s20 + $0xa48] sm:$0xff] (%p3474_p11), %v2335_v25 }
 0x26b   : > { %2566 = vst.msk [vmem:[%s3723_s18 + $0x3b8] sm:$0xff] %vm496_vm0, %v1052_v31  ;;  %2565 = vst.msk [vmem:[%s3723_s18 + $0x3b0] sm:$0xff] %vm496_vm0, %v1050_v33  ;;  %v2085_v31 = vld [vmem:[%s3723_s18 + $0x160] sm:$0xff] (%p3474_p11)  ;;  %v2087_v33 = vld [vmem:[%s3723_s18 + $0x168] sm:$0xff] (%p3474_p11) }
 0x26c   : > { %2086 = vst [vmem:[%s4622_s20 + $0x260] sm:$0xff] (%p3474_p11), %v2085_v31  ;;  %2088 = vst [vmem:[%s4622_s20 + $0x268] sm:$0xff] (%p3474_p11), %v2087_v33  ;;  %v2213_v31 = vld [vmem:[%s3723_s18 + $0x360] sm:$0xff] (%p3474_p11)  ;;  %v2215_v33 = vld [vmem:[%s3723_s18 + $0x368] sm:$0xff] (%p3474_p11) }
 0x26d   : > { %2214 = vst [vmem:[%s4622_s20 + $0x660] sm:$0xff] (%p3474_p11), %v2213_v31  ;;  %2216 = vst [vmem:[%s4622_s20 + $0x668] sm:$0xff] (%p3474_p11), %v2215_v33  ;;  %v2341_v31 = vld [vmem:[%s3723_s18 + $0x560] sm:$0xff] (%p3474_p11)  ;;  %v2343_v33 = vld [vmem:[%s3723_s18 + $0x568] sm:$0xff] (%p3474_p11) }
 0x26e   : > { %v1496_v35 = vpop.permute.xlu1 %1495  ;;  %v1494_v40 = vpop.permute.xlu0 %1493  ;;  %2338 = vst [vmem:[%s4622_s20 + $0xa50] sm:$0xff] (%p3474_p11), %v2337_v27  ;;  %2340 = vst [vmem:[%s4622_s20 + $0xa58] sm:$0xff] (%p3474_p11), %v2339_v28 }
 0x26f   : > { %2631 = vst.msk [vmem:[%s3723_s18 + $0x5b8] sm:$0xff] %vm496_vm0, %v1496_v35  ;;  %2630 = vst.msk [vmem:[%s3723_s18 + $0x5b0] sm:$0xff] %vm496_vm0, %v1494_v40  ;;  %v2089_v35 = vld [vmem:[%s3723_s18 + $0x170] sm:$0xff] (%p3474_p11)  ;;  %v2091_v40 = vld [vmem:[%s3723_s18 + $0x178] sm:$0xff] (%p3474_p11) }
 0x270   : > { %2090 = vst [vmem:[%s4622_s20 + $0x270] sm:$0xff] (%p3474_p11), %v2089_v35  ;;  %2092 = vst [vmem:[%s4622_s20 + $0x278] sm:$0xff] (%p3474_p11), %v2091_v40  ;;  %v2217_v35 = vld [vmem:[%s3723_s18 + $0x370] sm:$0xff] (%p3474_p11)  ;;  %v2219_v40 = vld [vmem:[%s3723_s18 + $0x378] sm:$0xff] (%p3474_p11) }
 0x271   : > { %2218 = vst [vmem:[%s4622_s20 + $0x670] sm:$0xff] (%p3474_p11), %v2217_v35  ;;  %2220 = vst [vmem:[%s4622_s20 + $0x678] sm:$0xff] (%p3474_p11), %v2219_v40  ;;  %v2345_v35 = vld [vmem:[%s3723_s18 + $0x570] sm:$0xff] (%p3474_p11)  ;;  %v2347_v40 = vld [vmem:[%s3723_s18 + $0x578] sm:$0xff] (%p3474_p11) }
 0x272   : > { %v1056_v44 = vpop.permute.xlu1 %1055  ;;  %v1054_v9 = vpop.permute.xlu0 %1053  ;;  %2342 = vst [vmem:[%s4622_s20 + $0xa60] sm:$0xff] (%p3474_p11), %v2341_v31  ;;  %2344 = vst [vmem:[%s4622_s20 + $0xa68] sm:$0xff] (%p3474_p11), %v2343_v33 }
 0x273   : > { %2568 = vst.msk [vmem:[%s3723_s18 + $0x3c8] sm:$0xff] %vm496_vm0, %v1056_v44  ;;  %2567 = vst.msk [vmem:[%s3723_s18 + $0x3c0] sm:$0xff] %vm496_vm0, %v1054_v9  ;;  %v2093_v44 = vld [vmem:[%s3723_s18 + $0x180] sm:$0xff] (%p3474_p11)  ;;  %v2095_v9 = vld [vmem:[%s3723_s18 + $0x188] sm:$0xff] (%p3474_p11) }
 0x274   : > { %2094 = vst [vmem:[%s4622_s20 + $0x280] sm:$0xff] (%p3474_p11), %v2093_v44  ;;  %2096 = vst [vmem:[%s4622_s20 + $0x288] sm:$0xff] (%p3474_p11), %v2095_v9  ;;  %v2221_v44 = vld [vmem:[%s3723_s18 + $0x380] sm:$0xff] (%p3474_p11)  ;;  %v2223_v9 = vld [vmem:[%s3723_s18 + $0x388] sm:$0xff] (%p3474_p11) }
 0x275   : > { %2222 = vst [vmem:[%s4622_s20 + $0x680] sm:$0xff] (%p3474_p11), %v2221_v44  ;;  %2224 = vst [vmem:[%s4622_s20 + $0x688] sm:$0xff] (%p3474_p11), %v2223_v9  ;;  %v2349_v44 = vld [vmem:[%s3723_s18 + $0x580] sm:$0xff] (%p3474_p11)  ;;  %v2351_v9 = vld [vmem:[%s3723_s18 + $0x588] sm:$0xff] (%p3474_p11) }
 0x276   : > { %v1500_v46 = vpop.permute.xlu1 %1499  ;;  %v1498_v48 = vpop.permute.xlu0 %1497  ;;  %2346 = vst [vmem:[%s4622_s20 + $0xa70] sm:$0xff] (%p3474_p11), %v2345_v35  ;;  %2348 = vst [vmem:[%s4622_s20 + $0xa78] sm:$0xff] (%p3474_p11), %v2347_v40 }
 0x277   : > { %2633 = vst.msk [vmem:[%s3723_s18 + $0x5c8] sm:$0xff] %vm496_vm0, %v1500_v46  ;;  %2632 = vst.msk [vmem:[%s3723_s18 + $0x5c0] sm:$0xff] %vm496_vm0, %v1498_v48  ;;  %v2097_v46 = vld [vmem:[%s3723_s18 + $0x190] sm:$0xff] (%p3474_p11)  ;;  %v2099_v48 = vld [vmem:[%s3723_s18 + $0x198] sm:$0xff] (%p3474_p11) }
 0x278   : > { %2098 = vst [vmem:[%s4622_s20 + $0x290] sm:$0xff] (%p3474_p11), %v2097_v46  ;;  %2100 = vst [vmem:[%s4622_s20 + $0x298] sm:$0xff] (%p3474_p11), %v2099_v48  ;;  %v2225_v46 = vld [vmem:[%s3723_s18 + $0x390] sm:$0xff] (%p3474_p11)  ;;  %v2227_v48 = vld [vmem:[%s3723_s18 + $0x398] sm:$0xff] (%p3474_p11) }
 0x279   : > { %2226 = vst [vmem:[%s4622_s20 + $0x690] sm:$0xff] (%p3474_p11), %v2225_v46  ;;  %2228 = vst [vmem:[%s4622_s20 + $0x698] sm:$0xff] (%p3474_p11), %v2227_v48  ;;  %v2353_v46 = vld [vmem:[%s3723_s18 + $0x590] sm:$0xff] (%p3474_p11)  ;;  %v2355_v48 = vld [vmem:[%s3723_s18 + $0x598] sm:$0xff] (%p3474_p11) }
 0x27a   : > { %v1060_v51 = vpop.permute.xlu1 %1059  ;;  %v1058_v54 = vpop.permute.xlu0 %1057  ;;  %2350 = vst [vmem:[%s4622_s20 + $0xa80] sm:$0xff] (%p3474_p11), %v2349_v44  ;;  %2352 = vst [vmem:[%s4622_s20 + $0xa88] sm:$0xff] (%p3474_p11), %v2351_v9 }
 0x27b   : > { %2570 = vst.msk [vmem:[%s3723_s18 + $0x3d8] sm:$0xff] %vm496_vm0, %v1060_v51  ;;  %2569 = vst.msk [vmem:[%s3723_s18 + $0x3d0] sm:$0xff] %vm496_vm0, %v1058_v54  ;;  %v2101_v51 = vld [vmem:[%s3723_s18 + $0x1a0] sm:$0xff] (%p3474_p11)  ;;  %v2103_v54 = vld [vmem:[%s3723_s18 + $0x1a8] sm:$0xff] (%p3474_p11) }
 0x27c   : > { %2102 = vst [vmem:[%s4622_s20 + $0x2a0] sm:$0xff] (%p3474_p11), %v2101_v51  ;;  %2104 = vst [vmem:[%s4622_s20 + $0x2a8] sm:$0xff] (%p3474_p11), %v2103_v54  ;;  %v2229_v51 = vld [vmem:[%s3723_s18 + $0x3a0] sm:$0xff] (%p3474_p11)  ;;  %v2231_v54 = vld [vmem:[%s3723_s18 + $0x3a8] sm:$0xff] (%p3474_p11) }
 0x27d   : > { %2230 = vst [vmem:[%s4622_s20 + $0x6a0] sm:$0xff] (%p3474_p11), %v2229_v51  ;;  %2232 = vst [vmem:[%s4622_s20 + $0x6a8] sm:$0xff] (%p3474_p11), %v2231_v54  ;;  %v2357_v51 = vld [vmem:[%s3723_s18 + $0x5a0] sm:$0xff] (%p3474_p11)  ;;  %v2359_v54 = vld [vmem:[%s3723_s18 + $0x5a8] sm:$0xff] (%p3474_p11) }
 0x27e   : > { %v1504_v59 = vpop.permute.xlu1 %1503  ;;  %v1502_v60 = vpop.permute.xlu0 %1501  ;;  %2354 = vst [vmem:[%s4622_s20 + $0xa90] sm:$0xff] (%p3474_p11), %v2353_v46  ;;  %2356 = vst [vmem:[%s4622_s20 + $0xa98] sm:$0xff] (%p3474_p11), %v2355_v48 }
 0x27f   : > { %2635 = vst.msk [vmem:[%s3723_s18 + $0x5d8] sm:$0xff] %vm496_vm0, %v1504_v59  ;;  %2634 = vst.msk [vmem:[%s3723_s18 + $0x5d0] sm:$0xff] %vm496_vm0, %v1502_v60  ;;  %v2105_v59 = vld [vmem:[%s3723_s18 + $0x1b0] sm:$0xff] (%p3474_p11)  ;;  %v2107_v60 = vld [vmem:[%s3723_s18 + $0x1b8] sm:$0xff] (%p3474_p11) }
 0x280   : > { %2106 = vst [vmem:[%s4622_s20 + $0x2b0] sm:$0xff] (%p3474_p11), %v2105_v59  ;;  %2108 = vst [vmem:[%s4622_s20 + $0x2b8] sm:$0xff] (%p3474_p11), %v2107_v60  ;;  %v2233_v59 = vld [vmem:[%s3723_s18 + $0x3b0] sm:$0xff] (%p3474_p11)  ;;  %v2235_v60 = vld [vmem:[%s3723_s18 + $0x3b8] sm:$0xff] (%p3474_p11) }
 0x281   : > { %2234 = vst [vmem:[%s4622_s20 + $0x6b0] sm:$0xff] (%p3474_p11), %v2233_v59  ;;  %2236 = vst [vmem:[%s4622_s20 + $0x6b8] sm:$0xff] (%p3474_p11), %v2235_v60  ;;  %v2361_v59 = vld [vmem:[%s3723_s18 + $0x5b0] sm:$0xff] (%p3474_p11)  ;;  %v2363_v60 = vld [vmem:[%s3723_s18 + $0x5b8] sm:$0xff] (%p3474_p11) }
 0x282   : > { %v1064_v62 = vpop.permute.xlu1 %1063  ;;  %v1062_v3 = vpop.permute.xlu0 %1061  ;;  %2358 = vst [vmem:[%s4622_s20 + $0xaa0] sm:$0xff] (%p3474_p11), %v2357_v51  ;;  %2360 = vst [vmem:[%s4622_s20 + $0xaa8] sm:$0xff] (%p3474_p11), %v2359_v54 }
 0x283   : > { %2572 = vst.msk [vmem:[%s3723_s18 + $0x3e8] sm:$0xff] %vm496_vm0, %v1064_v62  ;;  %2571 = vst.msk [vmem:[%s3723_s18 + $0x3e0] sm:$0xff] %vm496_vm0, %v1062_v3  ;;  %v2109_v62 = vld [vmem:[%s3723_s18 + $0x1c0] sm:$0xff] (%p3474_p11)  ;;  %v2111_v3 = vld [vmem:[%s3723_s18 + $0x1c8] sm:$0xff] (%p3474_p11) }
 0x284   : > { %2110 = vst [vmem:[%s4622_s20 + $0x2c0] sm:$0xff] (%p3474_p11), %v2109_v62  ;;  %2112 = vst [vmem:[%s4622_s20 + $0x2c8] sm:$0xff] (%p3474_p11), %v2111_v3  ;;  %v2237_v62 = vld [vmem:[%s3723_s18 + $0x3c0] sm:$0xff] (%p3474_p11)  ;;  %v2239_v3 = vld [vmem:[%s3723_s18 + $0x3c8] sm:$0xff] (%p3474_p11) }
 0x285   : > { %2238 = vst [vmem:[%s4622_s20 + $0x6c0] sm:$0xff] (%p3474_p11), %v2237_v62  ;;  %2240 = vst [vmem:[%s4622_s20 + $0x6c8] sm:$0xff] (%p3474_p11), %v2239_v3  ;;  %v2365_v62 = vld [vmem:[%s3723_s18 + $0x5c0] sm:$0xff] (%p3474_p11)  ;;  %v2367_v3 = vld [vmem:[%s3723_s18 + $0x5c8] sm:$0xff] (%p3474_p11) }
 0x286   : > { %v1508_v6 = vpop.permute.xlu1 %1507  ;;  %v1506_v8 = vpop.permute.xlu0 %1505  ;;  %2362 = vst [vmem:[%s4622_s20 + $0xab0] sm:$0xff] (%p3474_p11), %v2361_v59  ;;  %2364 = vst [vmem:[%s4622_s20 + $0xab8] sm:$0xff] (%p3474_p11), %v2363_v60 }
 0x287   : > { %2637 = vst.msk [vmem:[%s3723_s18 + $0x5e8] sm:$0xff] %vm496_vm0, %v1508_v6  ;;  %2636 = vst.msk [vmem:[%s3723_s18 + $0x5e0] sm:$0xff] %vm496_vm0, %v1506_v8  ;;  %v2113_v6 = vld [vmem:[%s3723_s18 + $0x1d0] sm:$0xff] (%p3474_p11)  ;;  %v2115_v8 = vld [vmem:[%s3723_s18 + $0x1d8] sm:$0xff] (%p3474_p11) }
 0x288   : > { %2114 = vst [vmem:[%s4622_s20 + $0x2d0] sm:$0xff] (%p3474_p11), %v2113_v6  ;;  %2116 = vst [vmem:[%s4622_s20 + $0x2d8] sm:$0xff] (%p3474_p11), %v2115_v8  ;;  %v2241_v6 = vld [vmem:[%s3723_s18 + $0x3d0] sm:$0xff] (%p3474_p11)  ;;  %v2243_v8 = vld [vmem:[%s3723_s18 + $0x3d8] sm:$0xff] (%p3474_p11) }
 0x289   : > { %1584 = sbr.rel (!%p3474_p11) target bundleno = 664 (0x298), region = 48  ;;  %2242 = vst [vmem:[%s4622_s20 + $0x6d0] sm:$0xff] (%p3474_p11), %v2241_v6  ;;  %2244 = vst [vmem:[%s4622_s20 + $0x6d8] sm:$0xff] (%p3474_p11), %v2243_v8  ;;  %v2369_v6 = vld [vmem:[%s3723_s18 + $0x5d0] sm:$0xff] (%p3474_p11)  ;;  %v2371_v8 = vld [vmem:[%s3723_s18 + $0x5d8] sm:$0xff] (%p3474_p11) }
 0x28a   : > { %v1068_v13 = vpop.permute.xlu1 %1067  ;;  %v1066_v16 = vpop.permute.xlu0 %1065  ;;  %2366 = vst [vmem:[%s4622_s20 + $0xac0] sm:$0xff] (%p3474_p11), %v2365_v62  ;;  %2368 = vst [vmem:[%s4622_s20 + $0xac8] sm:$0xff] (%p3474_p11), %v2367_v3 }
 0x28b   : > { %2574 = vst.msk [vmem:[%s3723_s18 + $0x3f8] sm:$0xff] %vm496_vm0, %v1068_v13  ;;  %2573 = vst.msk [vmem:[%s3723_s18 + $0x3f0] sm:$0xff] %vm496_vm0, %v1066_v16  ;;  %v2117_v13 = vld [vmem:[%s3723_s18 + $0x1e0] sm:$0xff] (%p3474_p11)  ;;  %v2119_v16 = vld [vmem:[%s3723_s18 + $0x1e8] sm:$0xff] (%p3474_p11) }
 0x28c   : > { %2118 = vst [vmem:[%s4622_s20 + $0x2e0] sm:$0xff] (%p3474_p11), %v2117_v13  ;;  %2120 = vst [vmem:[%s4622_s20 + $0x2e8] sm:$0xff] (%p3474_p11), %v2119_v16  ;;  %v2245_v13 = vld [vmem:[%s3723_s18 + $0x3e0] sm:$0xff] (%p3474_p11)  ;;  %v2247_v16 = vld [vmem:[%s3723_s18 + $0x3e8] sm:$0xff] (%p3474_p11) }
 0x28d   : > { %2246 = vst [vmem:[%s4622_s20 + $0x6e0] sm:$0xff] (%p3474_p11), %v2245_v13  ;;  %2248 = vst [vmem:[%s4622_s20 + $0x6e8] sm:$0xff] (%p3474_p11), %v2247_v16 }
 0x28e   : > { %v1512_v21 = vpop.permute.xlu1 %1511  ;;  %v1510_v22 = vpop.permute.xlu0 %1509  ;;  %v2373_v13 = vld [vmem:[%s3723_s18 + $0x5e0] sm:$0xff] (%p3474_p11)  ;;  %2370 = vst [vmem:[%s4622_s20 + $0xad0] sm:$0xff] (%p3474_p11), %v2369_v6  ;;  %2372 = vst [vmem:[%s4622_s20 + $0xad8] sm:$0xff] (%p3474_p11), %v2371_v8  ;;  %v2375_v16 = vld [vmem:[%s3723_s18 + $0x5e8] sm:$0xff] (%p3474_p11) }
 0x28f   : > { %2639 = vst.msk [vmem:[%s3723_s18 + $0x5f8] sm:$0xff] %vm496_vm0, %v1512_v21  ;;  %2638 = vst.msk [vmem:[%s3723_s18 + $0x5f0] sm:$0xff] %vm496_vm0, %v1510_v22  ;;  %v2121_v21 = vld [vmem:[%s3723_s18 + $0x1f0] sm:$0xff] (%p3474_p11)  ;;  %v2123_v22 = vld [vmem:[%s3723_s18 + $0x1f8] sm:$0xff] (%p3474_p11) }
 0x290   : > { %2122 = vst [vmem:[%s4622_s20 + $0x2f0] sm:$0xff] %v2121_v21  ;;  %2124 = vst [vmem:[%s4622_s20 + $0x2f8] sm:$0xff] %v2123_v22 }
 0x291   : > { %2374 = vst [vmem:[%s4622_s20 + $0xae0] sm:$0xff] %v2373_v13  ;;  %2376 = vst [vmem:[%s4622_s20 + $0xae8] sm:$0xff] %v2375_v16 }
 0x292   : > { %v2249_v21 = vld [vmem:[%s3723_s18 + $0x3f0] sm:$0xff]  ;;  %v2251_v22 = vld [vmem:[%s3723_s18 + $0x3f8] sm:$0xff] }
 0x293   : > { %2250 = vst [vmem:[%s4622_s20 + $0x6f0] sm:$0xff] %v2249_v21  ;;  %2252 = vst [vmem:[%s4622_s20 + $0x6f8] sm:$0xff] %v2251_v22 }
 0x296   : > { %v2377_v21 = vld [vmem:[%s3723_s18 + $0x5f0] sm:$0xff]  ;;  %v2379_v22 = vld [vmem:[%s3723_s18 + $0x5f8] sm:$0xff] }
 0x297   : > { %2378 = vst [vmem:[%s4622_s20 + $0xaf0] sm:$0xff] %v2377_v21  ;;  %2380 = vst [vmem:[%s4622_s20 + $0xaf8] sm:$0xff] %v2379_v22 }
 0x298 PF: > { %p14_p11 = scmp.ge.s32.totalorder %s3460_s30, 4   ;;  %s5035_s12 = smov %s3324_s13 }
 0x299   : > { %s5036_s13 = smov %s3328_s14  ;;  %s5037_s14 = smov %s3470_s8 }
 0x29a   : > { %s5038_s15 = smov %s3460_s30  ;;  %16 = sbr.rel (!%p14_p11) target bundleno = 4 (0x4), region = 127 }
 0x2a1   :  { %2396 = vsyncpa [#allocation3], 1 }
 0x2a2   :  { %2398 = vsyncpa [#allocation3 + $0x1], 1 }
 0x2a3   :  { %2399 = vsyncpa [#allocation5], 1 }

</bundles_post_ra>
